<compile_context>
chip_gen: v7x
topology: tpu7x:2x2x1
jax: 0.10.0
libtpu: 0.0.40
codegen_flags: <defaults>
</compile_context>

<pallas_src>
import functools
import math

import jax
import jax.numpy as jnp
from jax.experimental import pallas as pl
from jax.experimental.pallas import tpu as pltpu


def _qmix_kernel(x_ref, w1_ref, wf_ref, b_ref, out_ref, *, leaky_alpha):
    # x:   (tb, in_dim)        natural layout, batch on sublanes
    # w1:  (in_dim, embed_dim) abs() pre-applied, VMEM-resident
    # wf:  (1, embed_dim)      abs(wfinal)^T,   VMEM-resident
    # b:   (1, 1)              scalar bias in SMEM
    # out: (tb // 128, 128)    lane-dense q_tot slab
    x = x_ref[...].astype(jnp.float32)
    # (tb, in_dim) @ (in_dim, embed_dim) on the MXU, f32 accumulation.
    h = jnp.dot(x, w1_ref[...], preferred_element_type=jnp.float32)
    h = jnp.where(h >= 0, h, leaky_alpha * h)                 # LeakyReLU
    # Free leading-axis split (tb, e) -> (tb//128, 128, e); the embed -> 1
    # stage is a VPU multiply + lane reduce; the resulting sublane->lane
    # relayout (XLU) hides under the x DMA and yields a lane-dense store.
    g = out_ref.shape[0]
    h3 = h.reshape(g, 128, h.shape[-1])
    y = jnp.sum(h3 * wf_ref[...], axis=-1) + b_ref[0, 0]       # (g, 128)
    out_ref[...] = y.astype(out_ref.dtype)


def _round_up(a, m):
    return ((a + m - 1) // m) * m


def qmixer_wos_forward(agent_qs, w1, wfinal, bfinal, states=None, *,
                       leaky_alpha=0.01, tile_b=16384):
    """agent_qs: any shape with leading batch dim `bs` whose total element
    count is divisible by in_dim (mirrors PyTorch's .view(-1, 1, in_dim)).
    Returns q_tot of shape (bs, -1, 1).  `states` is unused (as in the module).
    """
    del states
    in_dim, embed_dim = w1.shape
    bs = agent_qs.shape[0]
    total = agent_qs.size
    assert total % in_dim == 0, (
        f"agent_qs has {total} elements, not divisible by in_dim={in_dim}")

    x = agent_qs.reshape(-1, in_dim)          # free view/bitcast, native dtype
    bs2 = x.shape[0]

    # Batch tile: multiple of 1024 (= 8 sublanes * 128 lanes) so the
    # (tb//128, 128) output block is fully aligned.  Cap it so the grid has
    # >= 2 steps whenever bs2 allows it (keeps the "parallel" axis splittable
    # across v7x's two TensorCores); never pad x in HBM.
    tb = max(1024, _round_up(int(tile_b), 1024))
    tb = min(tb, max(1024, _round_up(pl.cdiv(bs2, 2), 1024)))
    n_blocks = pl.cdiv(bs2, tb)
    out_rows = n_blocks * (tb // 128)

    # Hoist abs() / transpose of the tiny weights out of the per-tile body.
    w1_abs = jnp.abs(w1).astype(jnp.float32)                       # (in_dim, e)
    wf_abs = jnp.abs(wfinal).astype(jnp.float32).reshape(1, embed_dim)
    b2d = jnp.asarray(bfinal, jnp.float32).reshape(1, 1)

    kernel = functools.partial(_qmix_kernel, leaky_alpha=float(leaky_alpha))

    elt = jnp.dtype(x.dtype).itemsize
    cost = pl.CostEstimate(
        flops=bs2 * (2 * in_dim * embed_dim + 4 * embed_dim),
        transcendentals=0,
        bytes_accessed=(bs2 * in_dim * elt                 # x stream in
                        + out_rows * 128 * 4               # q_tot stream out
                        + (in_dim * embed_dim + embed_dim + 1) * 4),
    )

    y = pl.pallas_call(
        kernel,
        out_shape=jax.ShapeDtypeStruct((out_rows, 128), jnp.float32),
        grid=(n_blocks,),
        in_specs=[
            pl.BlockSpec((tb, in_dim), lambda i: (i, 0)),           # x tiles
            pl.BlockSpec((in_dim, embed_dim), lambda i: (0, 0)),    # |w1| resident
            pl.BlockSpec((1, embed_dim), lambda i: (0, 0)),         # |wf|^T resident
            pl.BlockSpec(memory_space=pltpu.MemorySpace.SMEM),      # bias scalar
        ],
        out_specs=pl.BlockSpec((tb // 128, 128), lambda i: (i, 0)),
        compiler_params=pltpu.CompilerParams(
            dimension_semantics=("parallel",),
            vmem_limit_bytes=32 * 1024 * 1024,   # safe on v5e/v6e and v7x (64 MiB phys)
        ),
        cost_estimate=cost,
    )(x, w1_abs, wf_abs, b2d)

    # Padded tail rows (computed from stale VMEM contents) are sliced off here.
    return y.reshape(-1)[:bs2].reshape(bs, -1, 1)


def _reference_forward(agent_qs, w1, wfinal, bfinal, leaky_alpha):
    bs = agent_qs.shape[0]
    x = agent_qs.reshape(-1, w1.shape[0]).astype(jnp.float32)
    h = x @ jnp.abs(w1.astype(jnp.float32))
    h = jnp.where(h >= 0, h, leaky_alpha * h)
    y = h @ jnp.abs(wfinal.astype(jnp.float32)) + bfinal.astype(jnp.float32)
    return y.reshape(bs, -1, 1)


if __name__ == "__main__":
    # ---- synthetic config (mirrors args in __init__) ----
    n_agents = 4
    in_dim = (n_agents + n_agents ** 2) // 2      # 10
    embed_dim = 32
    leaky_alpha = 0.01

    key = jax.random.PRNGKey(0)
    k1, k2, k3, k4, k5, k6 = jax.random.split(key, 6)

    # kaiming_uniform_(a=sqrt(5)) -> U(-1/sqrt(fan_in), 1/sqrt(fan_in))
    bound_w1 = 1.0 / math.sqrt(in_dim)
    w1 = jax.random.uniform(k1, (in_dim, embed_dim), jnp.float32,
                            -bound_w1, bound_w1)
    bound_wf = 1.0 / math.sqrt(embed_dim)
    wfinal = jax.random.uniform(k2, (embed_dim, 1), jnp.float32,
                                -bound_wf, bound_wf)
    bfinal = jax.random.uniform(k3, (1,), jnp.float32, -bound_wf, bound_wf)

    # Case 1: tiny batch (bs2 = 16) -> single partial block.
    bs, T = 2, 8
    agent_qs = jax.random.normal(k4, (bs, T, in_dim), jnp.float32)
    q_tot = jax.block_until_ready(
        qmixer_wos_forward(agent_qs, w1, wfinal, bfinal,
                           leaky_alpha=leaky_alpha))
    ref = _reference_forward(agent_qs, w1, wfinal, bfinal, leaky_alpha)
    assert q_tot.shape == (bs, T, 1), q_tot.shape
    assert jnp.allclose(q_tot, ref, atol=1e-5, rtol=1e-5), \
        float(jnp.max(jnp.abs(q_tot - ref)))

    # Case 2: ragged multi-block grid. bs2 = 13*200 = 2600, tile_b=1024
    # -> grid of 3 tiles, last one partial (552 valid rows) handled in-kernel
    # (no jnp.pad of x in HBM).
    bs2_b, T2 = 13, 200
    agent_qs2 = jax.random.normal(k5, (bs2_b, T2, in_dim), jnp.float32)
    q_tot2 = jax.block_until_ready(
        qmixer_wos_forward(agent_qs2, w1, wfinal, bfinal,
                           leaky_alpha=leaky_alpha, tile_b=1024))
    ref2 = _reference_forward(agent_qs2, w1, wfinal, bfinal, leaky_alpha)
    assert q_tot2.shape == (bs2_b, T2, 1), q_tot2.shape
    assert jnp.allclose(q_tot2, ref2, atol=1e-5, rtol=1e-5), \
        float(jnp.max(jnp.abs(q_tot2 - ref2)))

    # Case 3: default tile path with the >=2-step heuristic. bs2 = 5000 ->
    # tb = 3072, grid = 2 (second block partial).
    bs3_b, T3 = 10, 500
    agent_qs3 = jax.random.normal(k6, (bs3_b, T3, in_dim), jnp.float32)
    q_tot3 = jax.block_until_ready(
        qmixer_wos_forward(agent_qs3, w1, wfinal, bfinal,
                           leaky_alpha=leaky_alpha))
    ref3 = _reference_forward(agent_qs3, w1, wfinal, bfinal, leaky_alpha)
    assert q_tot3.shape == (bs3_b, T3, 1), q_tot3.shape
    assert jnp.allclose(q_tot3, ref3, atol=1e-5, rtol=1e-5), \
        float(jnp.max(jnp.abs(q_tot3 - ref3)))

    print("KERNEL_OK")
</pallas_src>

<mosaic_0001>
module attributes {stable_mosaic.version = 11 : i64} {
  func.func @_qmix_kernel(%arg0: i32, %arg1: memref<1024x10xf32, #tpu.memory_space<vmem>>, %arg2: memref<10x32xf32, #tpu.memory_space<vmem>>, %arg3: memref<1x32xf32, #tpu.memory_space<vmem>>, %arg4: memref<1x1xf32, #tpu.memory_space<smem>>, %arg5: memref<8x128xf32, #tpu.memory_space<vmem>>) attributes {dimension_semantics = [#tpu.dimension_semantics<parallel>], iteration_bounds = array<i64: 1>, scalar_prefetch = 0 : i64, scratch_operands = 0 : i64, tpu.core_type = #tpu.core_type<tc>, window_params = [{transform_indices = @transform_0, window_bounds = array<i64: 1024, 10>}, {pipeline_mode = #tpu.pipeline_mode<synchronous>, transform_indices = @transform_1, window_bounds = array<i64: 10, 32>}, {pipeline_mode = #tpu.pipeline_mode<synchronous>, transform_indices = @transform_2, window_bounds = array<i64: 1, 32>}, {transform_indices = @transform_3, window_bounds = array<i64: 1, 1>}, {transform_indices = @transform_4, window_bounds = array<i64: 8, 128>}]} {
    %c0 = arith.constant 0 : index
    %c0_0 = arith.constant 0 : index
    %0 = vector.load %arg1[%c0, %c0_0] : memref<1024x10xf32, #tpu.memory_space<vmem>>, vector<1024x10xf32>
    %c0_1 = arith.constant 0 : index
    %c0_2 = arith.constant 0 : index
    %1 = vector.load %arg2[%c0_1, %c0_2] : memref<10x32xf32, #tpu.memory_space<vmem>>, vector<10x32xf32>
    %cst = arith.constant dense<0.000000e+00> : vector<1024x32xf32>
    %2 = tpu.matmul %0, %1, %cst {dimension_numbers = #tpu.dot_dimension_numbers<[1], [0], [0], [1], [0, 0, 1, 1], [], []>} : vector<1024x10xf32>, vector<10x32xf32>, vector<1024x32xf32> -> vector<1024x32xf32>
    %cst_3 = arith.constant 0.000000e+00 : f32
    %3 = vector.broadcast %cst_3 : f32 to vector<1024x32xf32>
    %4 = arith.cmpf oge, %2, %3 : vector<1024x32xf32>
    %cst_4 = arith.constant 0.00999999977 : f32
    %5 = vector.broadcast %cst_4 : f32 to vector<1024x32xf32>
    %6 = arith.mulf %5, %2 : vector<1024x32xf32>
    %7 = arith.select %4, %2, %6 : vector<1024x32xi1>, vector<1024x32xf32>
    %8 = vector.shape_cast %7 : vector<1024x32xf32> to vector<8x128x32xf32>
    %c0_5 = arith.constant 0 : index
    %c0_6 = arith.constant 0 : index
    %9 = vector.load %arg3[%c0_5, %c0_6] : memref<1x32xf32, #tpu.memory_space<vmem>>, vector<1x32xf32>
    %10 = vector.shape_cast %9 : vector<1x32xf32> to vector<1x1x32xf32>
    %11 = vector.broadcast %10 : vector<1x1x32xf32> to vector<8x128x32xf32>
    %12 = arith.mulf %8, %11 : vector<8x128x32xf32>
    %cst_7 = arith.constant dense<0.000000e+00> : vector<8x128xf32>
    %13 = vector.multi_reduction <add>, %12, %cst_7 [2] : vector<8x128x32xf32> to vector<8x128xf32>
    %c0_8 = arith.constant 0 : index
    %c0_9 = arith.constant 0 : index
    %14 = memref.load %arg4[%c0_8, %c0_9] : memref<1x1xf32, #tpu.memory_space<smem>>
    %15 = vector.broadcast %14 : f32 to vector<8x128xf32>
    %16 = arith.addf %13, %15 : vector<8x128xf32>
    %c0_10 = arith.constant 0 : index
    %c0_11 = arith.constant 0 : index
    %17 = vector.load %arg5[%c0_10, %c0_11] : memref<8x128xf32, #tpu.memory_space<vmem>>, vector<8x128xf32>
    tpu.vector_store %arg5[%c0_10, %c0_11], %16 {strides = array<i32>} : memref<8x128xf32, #tpu.memory_space<vmem>>, vector<8x128xf32>,
    return
  }
  func.func @transform_0(%arg0: i32) -> (i32, i32) {
    %c0_i32 = arith.constant 0 : i32
    %c0_i32_0 = arith.constant 0 : i32
    return %arg0, %c0_i32 : i32, i32
  }
  func.func @transform_1(%arg0: i32) -> (i32, i32) {
    %c0_i32 = arith.constant 0 : i32
    %c0_i32_0 = arith.constant 0 : i32
    %c0_i32_1 = arith.constant 0 : i32
    return %c0_i32, %c0_i32_0 : i32, i32
  }
  func.func @transform_2(%arg0: i32) -> (i32, i32) {
    %c0_i32 = arith.constant 0 : i32
    %c0_i32_0 = arith.constant 0 : i32
    %c0_i32_1 = arith.constant 0 : i32
    return %c0_i32, %c0_i32_0 : i32, i32
  }
  func.func @transform_3(%arg0: i32) -> (i32, i32) {
    %c0_i32 = arith.constant 0 : i32
    %c0_i32_0 = arith.constant 0 : i32
    %c0_i32_1 = arith.constant 0 : i32
    return %c0_i32, %c0_i32_0 : i32, i32
  }
  func.func @transform_4(%arg0: i32) -> (i32, i32) {
    %c0_i32 = arith.constant 0 : i32
    %c0_i32_0 = arith.constant 0 : i32
    return %arg0, %c0_i32 : i32, i32
  }
}

</mosaic_0001>

<bundles_post_ra>
// kernel: tpu_custom_call.1
= control target key start
LH: loop header
LB: loop body
LE: loop exit
PB: predicated region body
PF: predicated region fallthrough
CT: control target
= control target key end

     0   :  { %10 = vsyncpa [#allocation4], 0  ;;  %s5294_s0 = inlined_call_operand.hbm [shape: f32[16,10], index: 0, kind: input, shape index: {}]   ;;  %s5295_s1 = inlined_call_operand.hbm [shape: f32[10,32], index: 1, kind: input, shape index: {}]   ;;  %s5296_s2 = inlined_call_operand.vmem [shape: f32[1,32], index: 2, kind: input, shape index: {}]   ;;  %s5297_s3 = inlined_call_operand.<no memory space> [shape: f32[1,1], index: 3, kind: input, shape index: {}]   ;;  %s5298_s4 = inlined_call_operand.hbm [shape: f32[8,128], index: 4, kind: output, shape index: {}]  }
   0x1   :  { %11 = vsyncpa [#allocation7], 0 }
   0x2   :  { %12 = vsyncpa [#allocation5], 0 }
   0x3   :  { %17 = vsyncadd [#allocation4], 16128  ;;  %s3673_s15 = smov [#allocation3]   ;;  %s3601_s19 = scalar_lea.hbm %s5294_s0, 256 }
   0x4   :  { %s18_s16 = sshll.u32 %s3673_s15, 4  ;;  %p3602_p0 = scmp.ne.s32.totalorder %s5294_s0, %s3601_s19  ;;  %s19_s16 = int_to_ptr.vmem [resolvable:$true] %s18_s16 }
   0x5   :  { %p3605_p1 = scmp.lt.u32.totalorder %s3601_s19, %s5294_s0 }
   0x7   :  { %p3607_p2 = pnand %p3605_p1, %p3602_p0 }
   0x9   :  { %3610 = shalt.err (!%p3607_p2)
}
   0xa   :  { %s3611_s24 = scalar_lea.vmem %s19_s16, 256  ;;  %s3615_s25 = scalar_lea.vmem %s19_s16, 16384 }
   0xb   :  { %p3612_p3 = scmp.ne.s32.totalorder %s19_s16, %s3611_s24  ;;  %p3616_p4 = scmp.lt.s32.totalorder %s19_s16, %s19_s16 }
   0xc   :  { %p3617_p5 = scmp.lt.s32.totalorder %s3615_s25, %s3611_s24 }
   0xe   :  { %p3618_p6 = por %p3617_p5, %p3616_p4 }
  0x10   :  { %p3619_p7 = pnand %p3618_p6, %p3612_p3 }
  0x12   :  { %3622 = shalt.err (!%p3619_p7)
}
  0x13   :  { %s3674_s26 = smov 128   ;;  %s3675_s27 = smov 8  }
  0x14   :  { %24 = dma.hbm_to_vmem [thread:$0]  %s5294_s0, 256, %s19_s16, [#allocation4], %s3674_s26, %s3674_s26, %s3675_s27  }
  0x15   :  { %s3676_s30 = smov [#allocation6]   ;;  %s3623_s8 = scalar_lea.hbm %s5295_s1, 256 }
  0x16   :  { %s30_s5 = sshll.u32 %s3676_s30, 4  ;;  %p3624_p8 = scmp.ne.s32.totalorder %s5295_s1, %s3623_s8  ;;  %s31_s5 = int_to_ptr.vmem [resolvable:$true] %s30_s5 }
  0x17   :  { %p3627_p9 = scmp.lt.u32.totalorder %s3623_s8, %s5295_s1 }
  0x19   :  { %p3629_p10 = pnand %p3627_p9, %p3624_p8 }
  0x1b   :  { %3632 = shalt.err (!%p3629_p10)
}
  0x1c   :  { %s3633_s13 = scalar_lea.vmem %s31_s5, 256  ;;  %p3638_p12 = scmp.lt.s32.totalorder %s31_s5, %s31_s5 }
  0x1d   :  { %p3634_p11 = scmp.ne.s32.totalorder %s31_s5, %s3633_s13  ;;  %p3639_p13 = scmp.lt.s32.totalorder %s3633_s13, %s3633_s13 }
  0x1f   :  { %p3640_p0 = por %p3639_p13, %p3638_p12 }
  0x21   :  { %p3641_p1 = pnand %p3640_p0, %p3634_p11 }
  0x23   :  { %3644 = shalt.err (!%p3641_p1)
}
  0x24   :  { %36 = dma.hbm_to_vmem [thread:$0]  %s5295_s1, 256, %s31_s5, [#allocation7], %s3674_s26, %s3674_s26, %s3675_s27  }
  0x25   :  { %3667 = dma.done.wait [#allocation4], 16384  }
  0x26   :  { %3668 = vsyncadd [#allocation4], 4294950912 }
  0x27   :  { %3669 = dma.done.wait [#allocation7], 256  }
  0x28   :  { %3670 = vsyncadd [#allocation7], 4294967040  ;;  %vm562_vm0 = vcmask 1041408   ;;  %vm177_vm1 = vcmask 80896   ;;  %vm3677_vm2 = vmmov 1   ;;  %v175_v0 = vld [vmem:[#allocation6] sm:$0xff] }
  0x29   :  { %vm3586_vm3 = vmpackc.low %vm562_vm0, %vm3677_vm2  ;;  %v176_v1 = vld [vmem:[#allocation6 + $0x8] sm:$0x3]  ;;  %v47_v2 = vld [vmem:[#allocation3] sm:$0xff]  ;;  %vm1790_vm7 = vcmask 261120  }
  0x2a   :  { %v3585_v3 = vpack.c.bf16 %v176_v1, %v175_v0  ;;  %3393 = vmatprep.mubr.msk.f32.mxu0 %vm177_vm1, %v47_v2  ;;  %v111_v4 = vld [vmem:[#allocation3 + $0x200] sm:$0xff]  ;;  %v48_v5 = vld [vmem:[#allocation3 + $0x8] sm:$0xff]  ;;  %v49_v7 = vld [vmem:[#allocation3 + $0x10] sm:$0xff] }
  0x2b   :  { %3489 = vmatprep.mubr.msk.f32.mxu1 %vm177_vm1, %v111_v4  ;;  %v112_v6 = vld [vmem:[#allocation3 + $0x208] sm:$0xff]  ;;  %v113_v8 = vld [vmem:[#allocation3 + $0x210] sm:$0xff]  ;;  %v50_v9 = vld [vmem:[#allocation3 + $0x18] sm:$0xff] }
  0x2c   :  { %3587 = vmatprep.subr.msk.bf16.mxu0 %vm3586_vm3, %v3585_v3  ;;  %3591 = vmatprep.subr.msk.bf16.mxu1 %vm3586_vm3, %v3585_v3  ;;  %v114_v10 = vld [vmem:[#allocation3 + $0x218] sm:$0xff]  ;;  %v51_v11 = vld [vmem:[#allocation3 + $0x20] sm:$0xff]  ;;  %v52_v13 = vld [vmem:[#allocation3 + $0x28] sm:$0xff] }
  0x2d   :  { %3590 = vmatpush3.bf16.msk.msra.mxu0 %vm3586_vm3, %v3585_v3  ;;  %3592 = vmatpush3.bf16.msk.msra.mxu1 %vm3586_vm3, %v3585_v3  ;;  %v115_v12 = vld [vmem:[#allocation3 + $0x220] sm:$0xff]  ;;  %v116_v14 = vld [vmem:[#allocation3 + $0x228] sm:$0xff]  ;;  %v53_v15 = vld [vmem:[#allocation3 + $0x30] sm:$0xff] }
  0x2e   :  { %v117_v16 = vld [vmem:[#allocation3 + $0x230] sm:$0xff]  ;;  %v54_v17 = vld [vmem:[#allocation3 + $0x38] sm:$0xff]  ;;  %v55_v19 = vld [vmem:[#allocation3 + $0x40] sm:$0xff] }
  0x2f   :  { %v118_v18 = vld [vmem:[#allocation3 + $0x238] sm:$0xff]  ;;  %v119_v20 = vld [vmem:[#allocation3 + $0x240] sm:$0xff]  ;;  %v56_v21 = vld [vmem:[#allocation3 + $0x48] sm:$0xff] }
  0x30   :  { %3394 = vmatmul.mubr.msk.f32.vlgmr.msra.gmra.mrb[0].mxu0 %vm177_vm1, %v48_v5  ;;  %3490 = vmatmul.mubr.msk.f32.vlgmr.msra.gmra.mrb[0].mxu1 %vm177_vm1, %v112_v6  ;;  %v120_v22 = vld [vmem:[#allocation3 + $0x248] sm:$0xff]  ;;  %v57_v23 = vld [vmem:[#allocation3 + $0x50] sm:$0xff]  ;;  %v58_v25 = vld [vmem:[#allocation3 + $0x58] sm:$0xff] }
  0x31   :  { %3396 = vmatprep.mubr.msk.f32.mxu0 %vm177_vm1, %v49_v7  ;;  %3492 = vmatprep.mubr.msk.f32.mxu1 %vm177_vm1, %v113_v8  ;;  %v121_v24 = vld [vmem:[#allocation3 + $0x250] sm:$0xff]  ;;  %v122_v26 = vld [vmem:[#allocation3 + $0x258] sm:$0xff]  ;;  %v59_v27 = vld [vmem:[#allocation3 + $0x60] sm:$0xff] }
  0x32   :  { %v123_v28 = vld [vmem:[#allocation3 + $0x260] sm:$0xff]  ;;  %v60_v29 = vld [vmem:[#allocation3 + $0x68] sm:$0xff]  ;;  %v61_v31 = vld [vmem:[#allocation3 + $0x70] sm:$0xff] }
  0x33   :  { %v124_v30 = vld [vmem:[#allocation3 + $0x268] sm:$0xff]  ;;  %v125_v32 = vld [vmem:[#allocation3 + $0x270] sm:$0xff]  ;;  %v62_v33 = vld [vmem:[#allocation3 + $0x78] sm:$0xff] }
  0x34   :  { %3397 = vmatmul.mubr.msk.f32.gmra.mrb[2].mxu0 %vm177_vm1, %v50_v9  ;;  %3493 = vmatmul.mubr.msk.f32.gmra.mrb[2].mxu1 %vm177_vm1, %v114_v10  ;;  %v126_v34 = vld [vmem:[#allocation3 + $0x278] sm:$0xff]  ;;  %v63_v35 = vld [vmem:[#allocation3 + $0x80] sm:$0xff]  ;;  %v64_v37 = vld [vmem:[#allocation3 + $0x88] sm:$0xff] }
  0x35   :  { %3399 = vmatprep.mubr.msk.f32.mxu0 %vm177_vm1, %v51_v11  ;;  %3495 = vmatprep.mubr.msk.f32.mxu1 %vm177_vm1, %v115_v12  ;;  %v127_v36 = vld [vmem:[#allocation3 + $0x280] sm:$0xff]  ;;  %v128_v38 = vld [vmem:[#allocation3 + $0x288] sm:$0xff]  ;;  %v65_v39 = vld [vmem:[#allocation3 + $0x90] sm:$0xff] }
  0x36   :  { %v129_v40 = vld [vmem:[#allocation3 + $0x290] sm:$0xff]  ;;  %v66_v41 = vld [vmem:[#allocation3 + $0x98] sm:$0xff]  ;;  %v131_v43 = vld [vmem:[#allocation3 + $0x2a0] sm:$0xff] }
  0x37   :  { %v130_v42 = vld [vmem:[#allocation3 + $0x298] sm:$0xff]  ;;  %v67_v44 = vld [vmem:[#allocation3 + $0xa0] sm:$0xff]  ;;  %v132_v45 = vld [vmem:[#allocation3 + $0x2a8] sm:$0xff] }
  0x38   :  { %3400 = vmatmul.mubr.msk.f32.gmra.mrb[4].mxu0 %vm177_vm1, %v52_v13  ;;  %3496 = vmatmul.mubr.msk.f32.gmra.mrb[4].mxu1 %vm177_vm1, %v116_v14  ;;  %v68_v46 = vld [vmem:[#allocation3 + $0xa8] sm:$0xff]  ;;  %v133_v47 = vld [vmem:[#allocation3 + $0x2b0] sm:$0xff]  ;;  %v134_v49 = vld [vmem:[#allocation3 + $0x2b8] sm:$0xff] }
  0x39   :  { %3402 = vmatprep.mubr.msk.f32.mxu0 %vm177_vm1, %v53_v15  ;;  %3498 = vmatprep.mubr.msk.f32.mxu1 %vm177_vm1, %v117_v16  ;;  %v69_v48 = vld [vmem:[#allocation3 + $0xb0] sm:$0xff]  ;;  %v70_v50 = vld [vmem:[#allocation3 + $0xb8] sm:$0xff]  ;;  %v135_v51 = vld [vmem:[#allocation3 + $0x2c0] sm:$0xff] }
  0x3a   :  { %v71_v52 = vld [vmem:[#allocation3 + $0xc0] sm:$0xff]  ;;  %v136_v53 = vld [vmem:[#allocation3 + $0x2c8] sm:$0xff]  ;;  %v137_v55 = vld [vmem:[#allocation3 + $0x2d0] sm:$0xff] }
  0x3b   :  { %v72_v54 = vld [vmem:[#allocation3 + $0xc8] sm:$0xff]  ;;  %v73_v56 = vld [vmem:[#allocation3 + $0xd0] sm:$0xff]  ;;  %v138_v57 = vld [vmem:[#allocation3 + $0x2d8] sm:$0xff] }
  0x3c   :  { %3403 = vmatmul.mubr.msk.f32.gmra.mrb[6].mxu0 %vm177_vm1, %v54_v17  ;;  %3499 = vmatmul.mubr.msk.f32.gmra.mrb[6].mxu1 %vm177_vm1, %v118_v18  ;;  %v74_v58 = vld [vmem:[#allocation3 + $0xd8] sm:$0xff]  ;;  %v139_v59 = vld [vmem:[#allocation3 + $0x2e0] sm:$0xff]  ;;  %v140_v61 = vld [vmem:[#allocation3 + $0x2e8] sm:$0xff] }
  0x3d   :  { %3405 = vmatprep.mubr.msk.f32.mxu0 %vm177_vm1, %v55_v19  ;;  %3501 = vmatprep.mubr.msk.f32.mxu1 %vm177_vm1, %v119_v20  ;;  %v75_v60 = vld [vmem:[#allocation3 + $0xe0] sm:$0xff]  ;;  %v76_v62 = vld [vmem:[#allocation3 + $0xe8] sm:$0xff]  ;;  %v141_v63 = vld [vmem:[#allocation3 + $0x2f0] sm:$0xff] }
  0x3e   :  { %v77_v0 = vld [vmem:[#allocation3 + $0xf0] sm:$0xff]  ;;  %v142_v1 = vld [vmem:[#allocation3 + $0x2f8] sm:$0xff]  ;;  %v143_v3 = vld [vmem:[#allocation3 + $0x300] sm:$0xff] }
  0x3f   :  { %v78_v2 = vld [vmem:[#allocation3 + $0xf8] sm:$0xff]  ;;  %v79_v4 = vld [vmem:[#allocation3 + $0x100] sm:$0xff]  ;;  %v144_v5 = vld [vmem:[#allocation3 + $0x308] sm:$0xff] }
  0x40   :  { %3406 = vmatmul.mubr.msk.f32.gmra.mrb[8].mxu0 %vm177_vm1, %v56_v21  ;;  %3502 = vmatmul.mubr.msk.f32.gmra.mrb[8].mxu1 %vm177_vm1, %v120_v22  ;;  %v80_v6 = vld [vmem:[#allocation3 + $0x108] sm:$0xff]  ;;  %v145_v7 = vld [vmem:[#allocation3 + $0x310] sm:$0xff]  ;;  %v146_v9 = vld [vmem:[#allocation3 + $0x318] sm:$0xff] }
  0x41   :  { %3408 = vmatprep.mubr.msk.f32.mxu0 %vm177_vm1, %v57_v23  ;;  %3504 = vmatprep.mubr.msk.f32.mxu1 %vm177_vm1, %v121_v24  ;;  %v81_v8 = vld [vmem:[#allocation3 + $0x110] sm:$0xff]  ;;  %v82_v10 = vld [vmem:[#allocation3 + $0x118] sm:$0xff]  ;;  %v83_v11 = vld [vmem:[#allocation3 + $0x120] sm:$0xff] }
  0x42   :  { %v147_v12 = vld [vmem:[#allocation3 + $0x320] sm:$0xff]  ;;  %v84_v13 = vld [vmem:[#allocation3 + $0x128] sm:$0xff]  ;;  %v85_v15 = vld [vmem:[#allocation3 + $0x130] sm:$0xff] }
  0x43   :  { %v148_v14 = vld [vmem:[#allocation3 + $0x328] sm:$0xff]  ;;  %v149_v16 = vld [vmem:[#allocation3 + $0x330] sm:$0xff]  ;;  %v86_v17 = vld [vmem:[#allocation3 + $0x138] sm:$0xff] }
  0x44   :  { %3409 = vmatmul.mubr.msk.f32.gmra.mrb[10].mxu0 %vm177_vm1, %v58_v25  ;;  %3505 = vmatmul.mubr.msk.f32.gmra.mrb[10].mxu1 %vm177_vm1, %v122_v26  ;;  %v150_v18 = vld [vmem:[#allocation3 + $0x338] sm:$0xff]  ;;  %v87_v19 = vld [vmem:[#allocation3 + $0x140] sm:$0xff]  ;;  %v88_v21 = vld [vmem:[#allocation3 + $0x148] sm:$0xff] }
  0x45   :  { %3411 = vmatprep.mubr.msk.f32.mxu0 %vm177_vm1, %v59_v27  ;;  %3507 = vmatprep.mubr.msk.f32.mxu1 %vm177_vm1, %v123_v28  ;;  %v151_v20 = vld [vmem:[#allocation3 + $0x340] sm:$0xff]  ;;  %v152_v22 = vld [vmem:[#allocation3 + $0x348] sm:$0xff]  ;;  %v89_v23 = vld [vmem:[#allocation3 + $0x150] sm:$0xff] }
  0x46   :  { %v153_v24 = vld [vmem:[#allocation3 + $0x350] sm:$0xff]  ;;  %v90_v25 = vld [vmem:[#allocation3 + $0x158] sm:$0xff]  ;;  %v91_v27 = vld [vmem:[#allocation3 + $0x160] sm:$0xff] }
  0x47   :  { %v154_v26 = vld [vmem:[#allocation3 + $0x358] sm:$0xff]  ;;  %v155_v28 = vld [vmem:[#allocation3 + $0x360] sm:$0xff] }
  0x48   :  { %3412 = vmatmul.mubr.msk.f32.gmra.mrb[12].mxu0 %vm177_vm1, %v60_v29  ;;  %3508 = vmatmul.mubr.msk.f32.gmra.mrb[12].mxu1 %vm177_vm1, %v124_v30  ;;  %v92_v29 = vld [vmem:[#allocation3 + $0x168] sm:$0xff] }
  0x49   :  { %3414 = vmatprep.mubr.msk.f32.mxu0 %vm177_vm1, %v61_v31  ;;  %3510 = vmatprep.mubr.msk.f32.mxu1 %vm177_vm1, %v125_v32  ;;  %v156_v30 = vld [vmem:[#allocation3 + $0x368] sm:$0xff]  ;;  %v93_v31 = vld [vmem:[#allocation3 + $0x170] sm:$0xff] }
  0x4a   :  { %v157_v32 = vld [vmem:[#allocation3 + $0x370] sm:$0xff] }
  0x4c   :  { %3415 = vmatmul.mubr.msk.f32.gmra.mrb[14].mxu0 %vm177_vm1, %v62_v33  ;;  %3511 = vmatmul.mubr.msk.f32.gmra.mrb[14].mxu1 %vm177_vm1, %v126_v34  ;;  %v94_v33 = vld [vmem:[#allocation3 + $0x178] sm:$0xff] }
  0x4d   :  { %3417 = vmatprep.mubr.msk.f32.mxu0 %vm177_vm1, %v63_v35  ;;  %3513 = vmatprep.mubr.msk.f32.mxu1 %vm177_vm1, %v127_v36  ;;  %v158_v34 = vld [vmem:[#allocation3 + $0x378] sm:$0xff]  ;;  %v159_v35 = vld [vmem:[#allocation3 + $0x380] sm:$0xff] }
  0x4e   :  { %v95_v36 = vld [vmem:[#allocation3 + $0x180] sm:$0xff] }
  0x50   :  { %3418 = vmatmul.mubr.msk.f32.gmra.mrb[16].mxu0 %vm177_vm1, %v64_v37  ;;  %3514 = vmatmul.mubr.msk.f32.gmra.mrb[16].mxu1 %vm177_vm1, %v128_v38  ;;  %v160_v37 = vld [vmem:[#allocation3 + $0x388] sm:$0xff] }
  0x51   :  { %3420 = vmatprep.mubr.msk.f32.mxu0 %vm177_vm1, %v65_v39  ;;  %3516 = vmatprep.mubr.msk.f32.mxu1 %vm177_vm1, %v129_v40  ;;  %v96_v38 = vld [vmem:[#allocation3 + $0x188] sm:$0xff]  ;;  %v161_v39 = vld [vmem:[#allocation3 + $0x390] sm:$0xff] }
  0x52   :  { %v97_v40 = vld [vmem:[#allocation3 + $0x190] sm:$0xff] }
  0x54   :  { %3421 = vmatmul.mubr.msk.f32.gmra.mrb[18].mxu0 %vm177_vm1, %v66_v41  ;;  %3517 = vmatmul.mubr.msk.f32.gmra.mrb[18].mxu1 %vm177_vm1, %v130_v42  ;;  %v162_v41 = vld [vmem:[#allocation3 + $0x398] sm:$0xff] }
  0x55   :  { %3519 = vmatprep.mubr.msk.f32.mxu1 %vm177_vm1, %v131_v43  ;;  %3423 = vmatprep.mubr.msk.f32.mxu0 %vm177_vm1, %v67_v44  ;;  %v98_v42 = vld [vmem:[#allocation3 + $0x198] sm:$0xff]  ;;  %v163_v43 = vld [vmem:[#allocation3 + $0x3a0] sm:$0xff] }
  0x56   :  { %v99_v44 = vld [vmem:[#allocation3 + $0x1a0] sm:$0xff] }
  0x58   :  { %3520 = vmatmul.mubr.msk.f32.gmra.mrb[20].mxu1 %vm177_vm1, %v132_v45  ;;  %3424 = vmatmul.mubr.msk.f32.gmra.mrb[20].mxu0 %vm177_vm1, %v68_v46  ;;  %v164_v45 = vld [vmem:[#allocation3 + $0x3a8] sm:$0xff] }
  0x59   :  { %3522 = vmatprep.mubr.msk.f32.mxu1 %vm177_vm1, %v133_v47  ;;  %3426 = vmatprep.mubr.msk.f32.mxu0 %vm177_vm1, %v69_v48  ;;  %v100_v46 = vld [vmem:[#allocation3 + $0x1a8] sm:$0xff]  ;;  %v165_v47 = vld [vmem:[#allocation3 + $0x3b0] sm:$0xff] }
  0x5a   :  { %v101_v48 = vld [vmem:[#allocation3 + $0x1b0] sm:$0xff] }
  0x5c   :  { %3523 = vmatmul.mubr.msk.f32.gmra.mrb[22].mxu1 %vm177_vm1, %v134_v49  ;;  %3427 = vmatmul.mubr.msk.f32.gmra.mrb[22].mxu0 %vm177_vm1, %v70_v50  ;;  %v166_v49 = vld [vmem:[#allocation3 + $0x3b8] sm:$0xff] }
  0x5d   :  { %3525 = vmatprep.mubr.msk.f32.mxu1 %vm177_vm1, %v135_v51  ;;  %3429 = vmatprep.mubr.msk.f32.mxu0 %vm177_vm1, %v71_v52  ;;  %v102_v50 = vld [vmem:[#allocation3 + $0x1b8] sm:$0xff]  ;;  %v167_v51 = vld [vmem:[#allocation3 + $0x3c0] sm:$0xff] }
  0x5e   :  { %v103_v52 = vld [vmem:[#allocation3 + $0x1c0] sm:$0xff] }
  0x60   :  { %3526 = vmatmul.mubr.msk.f32.gmra.mrb[24].mxu1 %vm177_vm1, %v136_v53  ;;  %3430 = vmatmul.mubr.msk.f32.gmra.mrb[24].mxu0 %vm177_vm1, %v72_v54  ;;  %v168_v53 = vld [vmem:[#allocation3 + $0x3c8] sm:$0xff] }
  0x61   :  { %3528 = vmatprep.mubr.msk.f32.mxu1 %vm177_vm1, %v137_v55  ;;  %3432 = vmatprep.mubr.msk.f32.mxu0 %vm177_vm1, %v73_v56  ;;  %v104_v54 = vld [vmem:[#allocation3 + $0x1c8] sm:$0xff]  ;;  %v169_v55 = vld [vmem:[#allocation3 + $0x3d0] sm:$0xff] }
  0x62   :  { %v105_v56 = vld [vmem:[#allocation3 + $0x1d0] sm:$0xff] }
  0x64   :  { %3529 = vmatmul.mubr.msk.f32.gmra.mrb[26].mxu1 %vm177_vm1, %v138_v57  ;;  %3433 = vmatmul.mubr.msk.f32.gmra.mrb[26].mxu0 %vm177_vm1, %v74_v58  ;;  %v170_v57 = vld [vmem:[#allocation3 + $0x3d8] sm:$0xff] }
  0x65   :  { %3531 = vmatprep.mubr.msk.f32.mxu1 %vm177_vm1, %v139_v59  ;;  %3435 = vmatprep.mubr.msk.f32.mxu0 %vm177_vm1, %v75_v60  ;;  %v106_v58 = vld [vmem:[#allocation3 + $0x1d8] sm:$0xff]  ;;  %v171_v59 = vld [vmem:[#allocation3 + $0x3e0] sm:$0xff] }
  0x66   :  { %v107_v60 = vld [vmem:[#allocation3 + $0x1e0] sm:$0xff] }
  0x68   :  { %3532 = vmatmul.mubr.msk.f32.gmra.mrb[28].mxu1 %vm177_vm1, %v140_v61  ;;  %3436 = vmatmul.mubr.msk.f32.gmra.mrb[28].mxu0 %vm177_vm1, %v76_v62  ;;  %v172_v61 = vld [vmem:[#allocation3 + $0x3e8] sm:$0xff] }
  0x69   :  { %3534 = vmatprep.mubr.msk.f32.mxu1 %vm177_vm1, %v141_v63  ;;  %3438 = vmatprep.mubr.msk.f32.mxu0 %vm177_vm1, %v77_v0  ;;  %v108_v62 = vld [vmem:[#allocation3 + $0x1e8] sm:$0xff]  ;;  %v109_v63 = vld [vmem:[#allocation3 + $0x1f0] sm:$0xff]  ;;  %v110_v0 = vld [vmem:[#allocation3 + $0x1f8] sm:$0xff] }
  0x6c   :  { %3535 = vmatmul.mubr.msk.f32.gmra.mrb[30].mxu1 %vm177_vm1, %v142_v1  ;;  %3439 = vmatmul.mubr.msk.f32.gmra.mrb[30].mxu0 %vm177_vm1, %v78_v2  ;;  %v173_v1 = vld [vmem:[#allocation3 + $0x3f0] sm:$0xff]  ;;  %v174_v2 = vld [vmem:[#allocation3 + $0x3f8] sm:$0xff] }
  0x6d   :  { %3537 = vmatprep.mubr.msk.f32.mxu1 %vm177_vm1, %v143_v3  ;;  %3441 = vmatprep.mubr.msk.f32.mxu0 %vm177_vm1, %v79_v4 }
  0x70   :  { %3538 = vmatmul.mubr.msk.f32.gmra.mrb[32].mxu1 %vm177_vm1, %v144_v5  ;;  %3442 = vmatmul.mubr.msk.f32.gmra.mrb[32].mxu0 %vm177_vm1, %v80_v6 }
  0x71   :  { %3540 = vmatprep.mubr.msk.f32.mxu1 %vm177_vm1, %v145_v7  ;;  %3444 = vmatprep.mubr.msk.f32.mxu0 %vm177_vm1, %v81_v8 }
  0x74   :  { %3541 = vmatmul.mubr.msk.f32.gmra.mrb[34].mxu1 %vm177_vm1, %v146_v9  ;;  %3445 = vmatmul.mubr.msk.f32.gmra.mrb[34].mxu0 %vm177_vm1, %v82_v10  ;;  %v3859_v9 = vld [vmem:[%s5296_s2] ss:$0 sm:$0xff] }
  0x75   :  { %3447 = vmatprep.mubr.msk.f32.mxu0 %vm177_vm1, %v83_v11  ;;  %3543 = vmatprep.mubr.msk.f32.mxu1 %vm177_vm1, %v147_v12 }
  0x78   :  { %3448 = vmatmul.mubr.msk.f32.gmra.mrb[36].mxu0 %vm177_vm1, %v84_v13  ;;  %3544 = vmatmul.mubr.msk.f32.gmra.mrb[36].mxu1 %vm177_vm1, %v148_v14 }
  0x79   :  { %3450 = vmatprep.mubr.msk.f32.mxu0 %vm177_vm1, %v85_v15  ;;  %3546 = vmatprep.mubr.msk.f32.mxu1 %vm177_vm1, %v149_v16 }
  0x7c   :  { %3451 = vmatmul.mubr.msk.f32.gmra.mrb[38].mxu0 %vm177_vm1, %v86_v17  ;;  %3547 = vmatmul.mubr.msk.f32.gmra.mrb[38].mxu1 %vm177_vm1, %v150_v18 }
  0x7d   :  { %3453 = vmatprep.mubr.msk.f32.mxu0 %vm177_vm1, %v87_v19  ;;  %3549 = vmatprep.mubr.msk.f32.mxu1 %vm177_vm1, %v151_v20 }
  0x80   :  { %3454 = vmatmul.mubr.msk.f32.gmra.mrb[40].mxu0 %vm177_vm1, %v88_v21  ;;  %3550 = vmatmul.mubr.msk.f32.gmra.mrb[40].mxu1 %vm177_vm1, %v152_v22 }
  0x81   :  { %3456 = vmatprep.mubr.msk.f32.mxu0 %vm177_vm1, %v89_v23  ;;  %3552 = vmatprep.mubr.msk.f32.mxu1 %vm177_vm1, %v153_v24 }
  0x84   :  { %3457 = vmatmul.mubr.msk.f32.gmra.mrb[42].mxu0 %vm177_vm1, %v90_v25  ;;  %3553 = vmatmul.mubr.msk.f32.gmra.mrb[42].mxu1 %vm177_vm1, %v154_v26 }
  0x85   :  { %3459 = vmatprep.mubr.msk.f32.mxu0 %vm177_vm1, %v91_v27  ;;  %3555 = vmatprep.mubr.msk.f32.mxu1 %vm177_vm1, %v155_v28 }
  0x88   :  { %3460 = vmatmul.mubr.msk.f32.gmra.mrb[44].mxu0 %vm177_vm1, %v92_v29  ;;  %3556 = vmatmul.mubr.msk.f32.gmra.mrb[44].mxu1 %vm177_vm1, %v156_v30 }
  0x89   :  { %3462 = vmatprep.mubr.msk.f32.mxu0 %vm177_vm1, %v93_v31  ;;  %3558 = vmatprep.mubr.msk.f32.mxu1 %vm177_vm1, %v157_v32 }
  0x8c   :  { %3463 = vmatmul.mubr.msk.f32.gmra.mrb[46].mxu0 %vm177_vm1, %v94_v33  ;;  %3559 = vmatmul.mubr.msk.f32.gmra.mrb[46].mxu1 %vm177_vm1, %v158_v34 }
  0x8d   :  { %3561 = vmatprep.mubr.msk.f32.mxu1 %vm177_vm1, %v159_v35  ;;  %3465 = vmatprep.mubr.msk.f32.mxu0 %vm177_vm1, %v95_v36 }
  0x90   :  { %3562 = vmatmul.mubr.msk.f32.gmra.mrb[48].mxu1 %vm177_vm1, %v160_v37  ;;  %3466 = vmatmul.mubr.msk.f32.gmra.mrb[48].mxu0 %vm177_vm1, %v96_v38 }
  0x91   :  { %3564 = vmatprep.mubr.msk.f32.mxu1 %vm177_vm1, %v161_v39  ;;  %3468 = vmatprep.mubr.msk.f32.mxu0 %vm177_vm1, %v97_v40 }
  0x94   :  { %3565 = vmatmul.mubr.msk.f32.gmra.mrb[50].mxu1 %vm177_vm1, %v162_v41  ;;  %3469 = vmatmul.mubr.msk.f32.gmra.mrb[50].mxu0 %vm177_vm1, %v98_v42 }
  0x95   :  { %3567 = vmatprep.mubr.msk.f32.mxu1 %vm177_vm1, %v163_v43  ;;  %3471 = vmatprep.mubr.msk.f32.mxu0 %vm177_vm1, %v99_v44 }
  0x98   :  { %3568 = vmatmul.mubr.msk.f32.gmra.mrb[52].mxu1 %vm177_vm1, %v164_v45  ;;  %3472 = vmatmul.mubr.msk.f32.gmra.mrb[52].mxu0 %vm177_vm1, %v100_v46 }
  0x99   :  { %3570 = vmatprep.mubr.msk.f32.mxu1 %vm177_vm1, %v165_v47  ;;  %3474 = vmatprep.mubr.msk.f32.mxu0 %vm177_vm1, %v101_v48 }
  0x9c   :  { %3571 = vmatmul.mubr.msk.f32.gmra.mrb[54].mxu1 %vm177_vm1, %v166_v49  ;;  %3475 = vmatmul.mubr.msk.f32.gmra.mrb[54].mxu0 %vm177_vm1, %v102_v50 }
  0x9d   :  { %3573 = vmatprep.mubr.msk.f32.mxu1 %vm177_vm1, %v167_v51  ;;  %3477 = vmatprep.mubr.msk.f32.mxu0 %vm177_vm1, %v103_v52 }
  0xa0   :  { %3574 = vmatmul.mubr.msk.f32.gmra.mrb[56].mxu1 %vm177_vm1, %v168_v53  ;;  %3478 = vmatmul.mubr.msk.f32.gmra.mrb[56].mxu0 %vm177_vm1, %v104_v54 }
  0xa1   :  { %3576 = vmatprep.mubr.msk.f32.mxu1 %vm177_vm1, %v169_v55  ;;  %3480 = vmatprep.mubr.msk.f32.mxu0 %vm177_vm1, %v105_v56 }
  0xa4   :  { %3577 = vmatmul.mubr.msk.f32.gmra.mrb[58].mxu1 %vm177_vm1, %v170_v57  ;;  %3481 = vmatmul.mubr.msk.f32.gmra.mrb[58].mxu0 %vm177_vm1, %v106_v58 }
  0xa5   :  { %3579 = vmatprep.mubr.msk.f32.mxu1 %vm177_vm1, %v171_v59  ;;  %3483 = vmatprep.mubr.msk.f32.mxu0 %vm177_vm1, %v107_v60 }
  0xa8   :  { %3580 = vmatmul.mubr.msk.f32.gmra.mrb[60].mxu1 %vm177_vm1, %v172_v61  ;;  %3484 = vmatmul.mubr.msk.f32.gmra.mrb[60].mxu0 %vm177_vm1, %v108_v62 }
  0xa9   :  { %3486 = vmatprep.mubr.msk.f32.mxu0 %vm177_vm1, %v109_v63  ;;  %3582 = vmatprep.mubr.msk.f32.mxu1 %vm177_vm1, %v173_v1 }
  0xac   :  { %3487 = vmatmul.mubr.msk.f32.gmra.mrb[62].mxu0 %vm177_vm1, %v110_v0  ;;  %3583 = vmatmul.mubr.msk.f32.gmra.mrb[62].mxu1 %vm177_vm1, %v174_v2 }
 0x103   :  { %v3395_v3 = vpop.f32.mrb[0].mxu0  ;;  %v3491_v4 = vpop.f32.mrb[0].mxu1 }
 0x104   :  { %vm1272_vm4 = vcmp.ge.f32.partialorder %v3395_v3, 0.0  ;;  %v1400_v5 = vmul.f32 0.01, %v3395_v3  ;;  %vm1336_vm5 = vcmp.ge.f32.partialorder %v3491_v4, 0.0  ;;  %v1464_v6 = vmul.f32 0.01, %v3491_v4 }
 0x105   :  { %v632_v7 = vpop.f32.mrb[1].mxu0  ;;  %v952_v8 = vpop.f32.mrb[1].mxu1 }
 0x106   :  { %v1399_v10 = vmul.f32 0.01, %v632_v7  ;;  %vm1271_vm6 = vcmp.ge.f32.partialorder %v632_v7, 0.0  ;;  %v1592_v13 = vsel %vm1336_vm5, %v3491_v4, %v1464_v6  ;;  %v1528_v14 = vsel %vm1272_vm4, %v3395_v3, %v1400_v5 }
 0x107   :  { %v3398_v11 = vpop.f32.mrb[2].mxu0  ;;  %v3494_v12 = vpop.f32.mrb[2].mxu1  ;;  %v1727_v17 = vmul.f32 %v3859_v9, %v1592_v13  ;;  %v1463_v19 = vmul.f32 0.01, %v952_v8  ;;  %vm1335_vm10 = vcmp.ge.f32.partialorder %v952_v8, 0.0  ;;  %v1663_v22 = vmul.f32 %v3859_v9, %v1528_v14 }
 0x108   :  { %vm1274_vm8 = vcmp.ge.f32.partialorder %v3398_v11, 0.0  ;;  %v1402_v15 = vmul.f32 0.01, %v3398_v11  ;;  %v642_v16 = vpop.f32.mrb[3].mxu0  ;;  %vm1338_vm9 = vcmp.ge.f32.partialorder %v3494_v12, 0.0  ;;  %v962_v18 = vpop.f32.mrb[3].mxu1  ;;  %v1527_v23 = vsel %vm1271_vm6, %v632_v7, %v1399_v10 }
 0x109   :  { %v1466_v20 = vmul.f32 0.01, %v3494_v12  ;;  %v1986_v21 = vsel %vm1790_vm7, %v1727_v17, 0.0  ;;  %v1401_v28 = vmul.f32 0.01, %v642_v16  ;;  %v1794_v29 = vsel %vm1790_vm7, %v1663_v22, 0.0 }
 0x10a   :  { %1987 = vadd.xlane.f32.xlu1 %v1986_v21  ;;  %v1530_v24 = vsel %vm1274_vm8, %v3398_v11, %v1402_v15  ;;  %v1662_v30 = vmul.f32 %v3859_v9, %v1527_v23  ;;  %vm1273_vm11 = vcmp.ge.f32.partialorder %v642_v16, 0.0  ;;  %v1465_v34 = vmul.f32 0.01, %v962_v18  ;;  %1795 = vadd.xlane.f32.xlu0 %v1794_v29 }
 0x10b   :  { %v3401_v25 = vpop.f32.mrb[4].mxu0  ;;  %v1594_v26 = vsel %vm1338_vm9, %v3494_v12, %v1466_v20  ;;  %v3497_v27 = vpop.f32.mrb[4].mxu1  ;;  %v1665_v31 = vmul.f32 %v3859_v9, %v1530_v24  ;;  %v1591_v35 = vsel %vm1335_vm10, %v952_v8, %v1463_v19  ;;  %vm1337_vm12 = vcmp.ge.f32.partialorder %v962_v18, 0.0 }
 0x10c   :  { %v652_v32 = vpop.f32.mrb[5].mxu0  ;;  %v972_v33 = vpop.f32.mrb[5].mxu1  ;;  %v1729_v37 = vmul.f32 %v3859_v9, %v1594_v26  ;;  %vm1276_vm13 = vcmp.ge.f32.partialorder %v3401_v25, 0.0  ;;  %v1404_v38 = vmul.f32 0.01, %v3401_v25  ;;  %v1791_v41 = vsel %vm1790_vm7, %v1662_v30, 0.0 }
 0x10d   :  { %v1800_v36 = vsel %vm1790_vm7, %v1665_v31, 0.0  ;;  %v1726_v42 = vmul.f32 %v3859_v9, %v1591_v35  ;;  %v1529_v44 = vsel %vm1273_vm11, %v642_v16, %v1401_v28  ;;  %v1403_v47 = vmul.f32 0.01, %v652_v32 }
 0x10e   :  { %1801 = vadd.xlane.f32.xlu1 %v1800_v36  ;;  %v1992_v43 = vsel %vm1790_vm7, %v1729_v37, 0.0  ;;  %1792 = vadd.xlane.f32.xlu0 %v1791_v41  ;;  %v1593_v48 = vsel %vm1337_vm12, %v962_v18, %v1465_v34  ;;  %vm1275_vm14 = vcmp.ge.f32.partialorder %v652_v32, 0.0  ;;  %v1664_v49 = vmul.f32 %v3859_v9, %v1529_v44 }
 0x10f   :  { %v3404_v39 = vpop.f32.mrb[6].mxu0  ;;  %v3871_v40 = vpop.f32.mrb[6].mxu1  ;;  %v1468_v50 = vmul.f32 0.01, %v3497_v27  ;;  %v1532_v51 = vsel %vm1276_vm13, %v3401_v25, %v1404_v38  ;;  %v1983_v54 = vsel %vm1790_vm7, %v1726_v42, 0.0  ;;  %vm1340_vm15 = vcmp.ge.f32.partialorder %v3497_v27, 0.0 }
 0x110   :  { %v662_v45 = vpop.f32.mrb[7].mxu0  ;;  %v3876_v46 = vpop.f32.mrb[7].mxu1  ;;  %v1728_v55 = vmul.f32 %v3859_v9, %v1593_v48  ;;  %v1467_v58 = vmul.f32 0.01, %v972_v33  ;;  %v1531_v59 = vsel %vm1275_vm14, %v652_v32, %v1403_v47  ;;  %vm1339_vm0 = vcmp.ge.f32.partialorder %v972_v33, 0.0 }
 0x111   :  { %v1797_v60 = vsel %vm1790_vm7, %v1664_v49, 0.0  ;;  %v1667_v61 = vmul.f32 %v3859_v9, %v1532_v51  ;;  %v1406_v62 = vmul.f32 0.01, %v3404_v39  ;;  %v1596_v63 = vsel %vm1340_vm15, %v3497_v27, %v1468_v50 }
 0x112   :  { %1993 = vadd.xlane.f32.xlu1 %v1992_v43  ;;  %1984 = vadd.xlane.f32.xlu0 %v1983_v54  ;;  %v1989_v2 = vsel %vm1790_vm7, %v1728_v55, 0.0  ;;  %vm1278_vm1 = vcmp.ge.f32.partialorder %v3404_v39, 0.0  ;;  %v1666_v3 = vmul.f32 %v3859_v9, %v1531_v59  ;;  %v1405_v6 = vmul.f32 0.01, %v662_v45 }
 0x113   :  { %v3881_v52 = vpop.f32.mrb[8].mxu0  ;;  %v3883_v53 = vpop.f32.mrb[8].mxu1  ;;  %v1595_v7 = vsel %vm1339_vm0, %v972_v33, %v1467_v58  ;;  %vm1277_vm2 = vcmp.ge.f32.partialorder %v662_v45, 0.0  ;;  %v1806_v8 = vsel %vm1790_vm7, %v1667_v61, 0.0  ;;  %v1731_v10 = vmul.f32 %v3859_v9, %v1596_v63 }
 0x114   :  { %v3887_v56 = vpop.f32.mrb[9].mxu0  ;;  %v3889_v57 = vpop.f32.mrb[9].mxu1  ;;  %v1470_v11 = vmul.f32 0.01, %v3871_v40  ;;  %v1534_v12 = vsel %vm1278_vm1, %v3404_v39, %v1406_v62  ;;  %v1803_v13 = vsel %vm1790_vm7, %v1666_v3, 0.0  ;;  %vm1342_vm3 = vcmp.ge.f32.partialorder %v3871_v40, 0.0 }
 0x115   :  { %v1730_v14 = vmul.f32 %v3859_v9, %v1595_v7  ;;  %v1469_v17 = vmul.f32 0.01, %v3876_v46  ;;  %v1533_v18 = vsel %vm1277_vm2, %v662_v45, %v1405_v6  ;;  %vm1341_vm4 = vcmp.ge.f32.partialorder %v3876_v46, 0.0 }
 0x116   :  { %1798 = vadd.xlane.f32.xlu1 %v1797_v60  ;;  %1990 = vadd.xlane.f32.xlu0 %v1989_v2  ;;  %v1998_v21 = vsel %vm1790_vm7, %v1731_v10, 0.0  ;;  %v1669_v22 = vmul.f32 %v3859_v9, %v1534_v12  ;;  %v1408_v23 = vmul.f32 0.01, %v3881_v52  ;;  %v1598_v24 = vsel %vm1342_vm3, %v3871_v40, %v1470_v11 }
 0x117   :  { %v3893_v0 = vpop.f32.mrb[10].mxu0  ;;  %v3895_v1 = vpop.f32.mrb[10].mxu1  ;;  %v1995_v27 = vsel %vm1790_vm7, %v1730_v14, 0.0  ;;  %vm1280_vm5 = vcmp.ge.f32.partialorder %v3881_v52, 0.0  ;;  %v1668_v28 = vmul.f32 %v3859_v9, %v1533_v18  ;;  %v1407_v29 = vmul.f32 0.01, %v3887_v56 }
 0x118   :  { %v3899_v4 = vpop.f32.mrb[11].mxu0  ;;  %v3901_v5 = vpop.f32.mrb[11].mxu1  ;;  %v1597_v30 = vsel %vm1341_vm4, %v3876_v46, %v1469_v17  ;;  %vm1279_vm6 = vcmp.ge.f32.partialorder %v3887_v56, 0.0  ;;  %v1812_v33 = vsel %vm1790_vm7, %v1669_v22, 0.0  ;;  %v1733_v34 = vmul.f32 %v3859_v9, %v1598_v24 }
 0x119   :  { %v1472_v35 = vmul.f32 0.01, %v3883_v53  ;;  %v1536_v36 = vsel %vm1280_vm5, %v3881_v52, %v1408_v23  ;;  %v1809_v39 = vsel %vm1790_vm7, %v1668_v28, 0.0  ;;  %vm1344_vm8 = vcmp.ge.f32.partialorder %v3883_v53, 0.0 }
 0x11a   :  { %1807 = vadd.xlane.f32.xlu1 %v1806_v8  ;;  %1804 = vadd.xlane.f32.xlu0 %v1803_v13  ;;  %v1732_v40 = vmul.f32 %v3859_v9, %v1597_v30  ;;  %v1471_v43 = vmul.f32 0.01, %v3889_v57  ;;  %v1535_v44 = vsel %vm1279_vm6, %v3887_v56, %v1407_v29  ;;  %vm1343_vm9 = vcmp.ge.f32.partialorder %v3889_v57, 0.0 }
 0x11b   :  { %v3909_v15 = vpop.f32.mrb[12].mxu0  ;;  %v3911_v16 = vpop.f32.mrb[12].mxu1  ;;  %v2004_v45 = vsel %vm1790_vm7, %v1733_v34, 0.0  ;;  %v1671_v46 = vmul.f32 %v3859_v9, %v1536_v36  ;;  %v1410_v47 = vmul.f32 0.01, %v3893_v0  ;;  %v1600_v48 = vsel %vm1344_vm8, %v3883_v53, %v1472_v35 }
 0x11c   :  { %v3914_v19 = vpop.f32.mrb[13].mxu0  ;;  %v3916_v20 = vpop.f32.mrb[13].mxu1  ;;  %v2001_v51 = vsel %vm1790_vm7, %v1732_v40, 0.0  ;;  %vm1282_vm10 = vcmp.ge.f32.partialorder %v3893_v0, 0.0  ;;  %v1670_v52 = vmul.f32 %v3859_v9, %v1535_v44  ;;  %v1409_v56 = vmul.f32 0.01, %v3899_v4 }
 0x11d   :  { %v1599_v58 = vsel %vm1343_vm9, %v3889_v57, %v1471_v43  ;;  %vm1281_vm11 = vcmp.ge.f32.partialorder %v3899_v4, 0.0  ;;  %v1818_v53 = vsel %vm1790_vm7, %v1671_v46, 0.0  ;;  %v1735_v59 = vmul.f32 %v3859_v9, %v1600_v48 }
 0x11e   :  { %1999 = vadd.xlane.f32.xlu1 %v1998_v21  ;;  %1996 = vadd.xlane.f32.xlu0 %v1995_v27  ;;  %v1474_v60 = vmul.f32 0.01, %v3895_v1  ;;  %v1538_v61 = vsel %vm1282_vm10, %v3893_v0, %v1410_v47  ;;  %v1815_v2 = vsel %vm1790_vm7, %v1670_v52, 0.0  ;;  %vm1346_vm12 = vcmp.ge.f32.partialorder %v3895_v1, 0.0 }
 0x11f   :  { %v3923_v25 = vpop.f32.mrb[14].mxu0  ;;  %v3925_v26 = vpop.f32.mrb[14].mxu1  ;;  %v1734_v57 = vmul.f32 %v3859_v9, %v1599_v58  ;;  %v1473_v7 = vmul.f32 0.01, %v3901_v5  ;;  %v1537_v8 = vsel %vm1281_vm11, %v3899_v4, %v1409_v56  ;;  %vm1345_vm13 = vcmp.ge.f32.partialorder %v3901_v5, 0.0 }
 0x120   :  { %v3932_v31 = vpop.f32.mrb[15].mxu0  ;;  %v3934_v32 = vpop.f32.mrb[15].mxu1  ;;  %v2010_v0 = vsel %vm1790_vm7, %v1735_v59, 0.0  ;;  %v1673_v10 = vmul.f32 %v3859_v9, %v1538_v61  ;;  %v1412_v11 = vmul.f32 0.01, %v3909_v15  ;;  %v1602_v12 = vsel %vm1346_vm12, %v3895_v1, %v1474_v60 }
 0x121   :  { %v2007_v13 = vsel %vm1790_vm7, %v1734_v57, 0.0  ;;  %vm1284_vm14 = vcmp.ge.f32.partialorder %v3909_v15, 0.0  ;;  %v1672_v14 = vmul.f32 %v3859_v9, %v1537_v8  ;;  %v1411_v18 = vmul.f32 0.01, %v3914_v19 }
 0x122   :  { %1813 = vadd.xlane.f32.xlu1 %v1812_v33  ;;  %1810 = vadd.xlane.f32.xlu0 %v1809_v39  ;;  %v1601_v21 = vsel %vm1345_vm13, %v3901_v5, %v1473_v7  ;;  %vm1283_vm15 = vcmp.ge.f32.partialorder %v3914_v19, 0.0  ;;  %v1824_v1 = vsel %vm1790_vm7, %v1673_v10, 0.0  ;;  %v1737_v24 = vmul.f32 %v3859_v9, %v1602_v12 }
 0x123   :  { %v3941_v37 = vpop.f32.mrb[16].mxu0  ;;  %v3943_v38 = vpop.f32.mrb[16].mxu1  ;;  %v1476_v27 = vmul.f32 0.01, %v3911_v16  ;;  %v1540_v28 = vsel %vm1284_vm14, %v3909_v15, %v1412_v11  ;;  %v1821_v5 = vsel %vm1790_vm7, %v1672_v14, 0.0  ;;  %vm1348_vm0 = vcmp.ge.f32.partialorder %v3911_v16, 0.0 }
 0x124   :  { %v3948_v41 = vpop.f32.mrb[17].mxu0  ;;  %v3950_v42 = vpop.f32.mrb[17].mxu1  ;;  %v1736_v33 = vmul.f32 %v3859_v9, %v1601_v21  ;;  %v1475_v34 = vmul.f32 0.01, %v3916_v20  ;;  %v1539_v35 = vsel %vm1283_vm15, %v3914_v19, %v1411_v18  ;;  %vm1347_vm1 = vcmp.ge.f32.partialorder %v3916_v20, 0.0 }
 0x125   :  { %v2016_v15 = vsel %vm1790_vm7, %v1737_v24, 0.0  ;;  %v1675_v39 = vmul.f32 %v3859_v9, %v1540_v28  ;;  %v1414_v43 = vmul.f32 0.01, %v3923_v25  ;;  %v1604_v44 = vsel %vm1348_vm0, %v3911_v16, %v1476_v27 }
 0x126   :  { %2005 = vadd.xlane.f32.xlu1 %v2004_v45  ;;  %2002 = vadd.xlane.f32.xlu0 %v2001_v51  ;;  %v2013_v19 = vsel %vm1790_vm7, %v1736_v33, 0.0  ;;  %vm1286_vm2 = vcmp.ge.f32.partialorder %v3923_v25, 0.0  ;;  %v1674_v47 = vmul.f32 %v3859_v9, %v1539_v35  ;;  %v1413_v52 = vmul.f32 0.01, %v3932_v31 }
 0x127   :  { %v3959_v49 = vpop.f32.mrb[18].mxu0  ;;  %v3961_v50 = vpop.f32.mrb[18].mxu1  ;;  %v1603_v16 = vsel %vm1347_vm1, %v3916_v20, %v1475_v34  ;;  %vm1285_vm3 = vcmp.ge.f32.partialorder %v3932_v31, 0.0  ;;  %v1830_v56 = vsel %vm1790_vm7, %v1675_v39, 0.0  ;;  %v1739_v58 = vmul.f32 %v3859_v9, %v1604_v44 }
 0x128   :  { %v3966_v54 = vpop.f32.mrb[19].mxu0  ;;  %v3968_v55 = vpop.f32.mrb[19].mxu1  ;;  %v1542_v59 = vsel %vm1286_vm2, %v3923_v25, %v1414_v43  ;;  %vm1350_vm4 = vcmp.ge.f32.partialorder %v3925_v26, 0.0  ;;  %v1738_v20 = vmul.f32 %v3859_v9, %v1603_v16  ;;  %v1477_v8 = vmul.f32 0.01, %v3934_v32 }
 0x129   :  { %vm1349_vm5 = vcmp.ge.f32.partialorder %v3934_v32, 0.0  ;;  %v2022_v25 = vsel %vm1790_vm7, %v1739_v58, 0.0  ;;  %v1677_v10 = vmul.f32 %v3859_v9, %v1542_v59  ;;  %v1416_v11 = vmul.f32 0.01, %v3941_v37 }
 0x12a   :  { %1819 = vadd.xlane.f32.xlu1 %v1818_v53  ;;  %1816 = vadd.xlane.f32.xlu0 %v1815_v2  ;;  %v1478_v53 = vmul.f32 0.01, %v3925_v26  ;;  %v1827_v2 = vsel %vm1790_vm7, %v1674_v47, 0.0  ;;  %v2019_v14 = vsel %vm1790_vm7, %v1738_v20, 0.0  ;;  %vm1288_vm6 = vcmp.ge.f32.partialorder %v3941_v37, 0.0 }
 0x12b   :  { %v3977_v62 = vpop.f32.mrb[20].mxu1  ;;  %v3979_v63 = vpop.f32.mrb[20].mxu0  ;;  %v1605_v24 = vsel %vm1349_vm5, %v3934_v32, %v1477_v8  ;;  %vm1287_vm8 = vcmp.ge.f32.partialorder %v3948_v41, 0.0  ;;  %v1544_v33 = vsel %vm1288_vm6, %v3941_v37, %v1416_v11  ;;  %vm1352_vm9 = vcmp.ge.f32.partialorder %v3943_v38, 0.0 }
 0x12c   :  { %v3984_v3 = vpop.f32.mrb[21].mxu1  ;;  %v3986_v6 = vpop.f32.mrb[21].mxu0  ;;  %v1606_v12 = vsel %vm1350_vm4, %v3925_v26, %v1478_v53  ;;  %v1836_v26 = vsel %vm1790_vm7, %v1677_v10, 0.0  ;;  %v1740_v32 = vmul.f32 %v3859_v9, %v1605_v24  ;;  %v1479_v39 = vmul.f32 0.01, %v3950_v42 }
 0x12d   :  { %v1741_v28 = vmul.f32 %v3859_v9, %v1606_v12  ;;  %vm1351_vm10 = vcmp.ge.f32.partialorder %v3950_v42, 0.0  ;;  %v1679_v47 = vmul.f32 %v3859_v9, %v1544_v33  ;;  %vm1290_vm11 = vcmp.ge.f32.partialorder %v3959_v49, 0.0 }
 0x12e   :  { %2011 = vadd.xlane.f32.xlu1 %v2010_v0  ;;  %2008 = vadd.xlane.f32.xlu0 %v2007_v13  ;;  %v1541_v0 = vsel %vm1285_vm3, %v3932_v31, %v1413_v52  ;;  %v1418_v52 = vmul.f32 0.01, %v3959_v49  ;;  %v1607_v20 = vsel %vm1351_vm10, %v3950_v42, %v1479_v39  ;;  %vm1289_vm12 = vcmp.ge.f32.partialorder %v3966_v54, 0.0 }
 0x12f   :  { %v3998_v17 = vpop.f32.mrb[22].mxu1  ;;  %v4000_v4 = vpop.f32.mrb[22].mxu0  ;;  %v1676_v18 = vmul.f32 %v3859_v9, %v1541_v0  ;;  %v2028_v37 = vsel %vm1790_vm7, %v1741_v28, 0.0  ;;  %vm1354_vm13 = vcmp.ge.f32.partialorder %v3961_v50, 0.0  ;;  %v1742_v42 = vmul.f32 %v3859_v9, %v1607_v20 }
 0x130   :  { %v4004_v22 = vpop.f32.mrb[23].mxu1  ;;  %v4006_v23 = vpop.f32.mrb[23].mxu0  ;;  %v1546_v10 = vsel %vm1290_vm11, %v3959_v49, %v1418_v52  ;;  %v1481_v24 = vmul.f32 0.01, %v3968_v55  ;;  %vm1353_vm14 = vcmp.ge.f32.partialorder %v3968_v55, 0.0  ;;  %vm1292_vm15 = vcmp.ge.f32.partialorder %v3979_v63, 0.0 }
 0x131   :  { %v1833_v35 = vsel %vm1790_vm7, %v1676_v18, 0.0  ;;  %v2031_v39 = vsel %vm1790_vm7, %v1742_v42, 0.0  ;;  %vm1356_vm0 = vcmp.ge.f32.partialorder %v3977_v62, 0.0  ;;  %vm1355_vm1 = vcmp.ge.f32.partialorder %v3984_v3, 0.0 }
 0x132   :  { %1825 = vadd.xlane.f32.xlu1 %v1824_v1  ;;  %1822 = vadd.xlane.f32.xlu0 %v1821_v5  ;;  %v1415_v1 = vmul.f32 0.01, %v3948_v41  ;;  %v1480_v5 = vmul.f32 0.01, %v3943_v38  ;;  %v1609_v52 = vsel %vm1353_vm14, %v3968_v55, %v1481_v24  ;;  %vm1291_vm2 = vcmp.ge.f32.partialorder %v3986_v6, 0.0 }
 0x133   :  { %v4013_v29 = vpop.f32.mrb[24].mxu1  ;;  %v4015_v30 = vpop.f32.mrb[24].mxu0  ;;  %vm1294_vm3 = vcmp.ge.f32.partialorder %v4000_v4, 0.0  ;;  %vm1358_vm4 = vcmp.ge.f32.partialorder %v3998_v17, 0.0  ;;  %vm1357_vm5 = vcmp.ge.f32.partialorder %v4004_v22, 0.0  ;;  %vm1293_vm6 = vcmp.ge.f32.partialorder %v4006_v23, 0.0 }
 0x134   :  { %v4022_v36 = vpop.f32.mrb[25].mxu1  ;;  %v4027_v40 = vpop.f32.mrb[25].mxu0  ;;  %v1543_v43 = vsel %vm1287_vm8, %v3948_v41, %v1415_v1  ;;  %v1608_v16 = vsel %vm1352_vm9, %v3943_v38, %v1480_v5  ;;  %v2025_v41 = vsel %vm1790_vm7, %v1740_v32, 0.0  ;;  %v1842_v38 = vsel %vm1790_vm7, %v1679_v47, 0.0 }
 0x135   :  { %v1678_v53 = vmul.f32 %v3859_v9, %v1543_v43  ;;  %v1743_v0 = vmul.f32 %v3859_v9, %v1608_v16  ;;  %v1681_v5 = vmul.f32 %v3859_v9, %v1546_v10  ;;  %v1484_v47 = vmul.f32 0.01, %v3977_v62 }
 0x136   :  { %2017 = vadd.xlane.f32.xlu1 %v2016_v15  ;;  %2014 = vadd.xlane.f32.xlu0 %v2013_v19  ;;  %v1422_v10 = vmul.f32 0.01, %v4000_v4  ;;  %vm1296_vm8 = vcmp.ge.f32.partialorder %v4015_v30, 0.0  ;;  %vm1360_vm9 = vcmp.ge.f32.partialorder %v4013_v29, 0.0  ;;  %vm1359_vm10 = vcmp.ge.f32.partialorder %v4022_v36, 0.0 }
 0x137   :  { %v4031_v45 = vpop.f32.mrb[26].mxu1  ;;  %v4033_v46 = vpop.f32.mrb[26].mxu0  ;;  %v2034_v28 = vsel %vm1790_vm7, %v1743_v0, 0.0  ;;  %vm1295_vm11 = vcmp.ge.f32.partialorder %v4027_v40, 0.0 }
 0x138   :  { %v4038_v48 = vpop.f32.mrb[27].mxu1  ;;  %v4040_v51 = vpop.f32.mrb[27].mxu0 }
 0x139   :  { %vm1361_vm14 = vcmp.ge.f32.partialorder %v4038_v48, 0.0 }
 0x13a   :  { %1831 = vadd.xlane.f32.xlu1 %v1830_v56  ;;  %1828 = vadd.xlane.f32.xlu0 %v1827_v2  ;;  %v1417_v2 = vmul.f32 0.01, %v3966_v54 }
 0x13b   :  { %v4051_v60 = vpop.f32.mrb[28].mxu1  ;;  %v4053_v61 = vpop.f32.mrb[28].mxu0 }
 0x13c   :  { %v4058_v57 = vpop.f32.mrb[29].mxu1  ;;  %v4060_v7 = vpop.f32.mrb[29].mxu0  ;;  %v1545_v49 = vsel %vm1289_vm12, %v3966_v54, %v1417_v2  ;;  %vm1298_vm12 = vcmp.ge.f32.partialorder %v4033_v46, 0.0 }
 0x13d   :  { %v1680_v43 = vmul.f32 %v3859_v9, %v1545_v49 }
 0x13e   :  { %2023 = vadd.xlane.f32.xlu1 %v2022_v25  ;;  %2020 = vadd.xlane.f32.xlu0 %v2019_v14  ;;  %v1482_v25 = vmul.f32 0.01, %v3961_v50  ;;  %v1839_v14 = vsel %vm1790_vm7, %v1678_v53, 0.0  ;;  %v1483_v53 = vmul.f32 0.01, %v3984_v3 }
 0x13f   :  { %v4069_v13 = vpop.f32.mrb[30].mxu1  ;;  %v4074_v31 = vpop.f32.mrb[30].mxu0  ;;  %v1845_v20 = vsel %vm1790_vm7, %v1680_v43, 0.0 }
 0x140   :  { %v4076_v21 = vpop.f32.mrb[31].mxu1  ;;  %v4080_v27 = vpop.f32.mrb[31].mxu0  ;;  %v1610_v33 = vsel %vm1354_vm13, %v3961_v50, %v1482_v25  ;;  %v1848_v50 = vsel %vm1790_vm7, %v1681_v5, 0.0  ;;  %v1419_v25 = vmul.f32 0.01, %v3986_v6  ;;  %vm1362_vm13 = vcmp.ge.f32.partialorder %v4031_v45, 0.0 }
 0x142   :  { %1837 = vadd.xlane.f32.xlu1 %v1836_v26  ;;  %1834 = vadd.xlane.f32.xlu0 %v1833_v35  ;;  %v1420_v26 = vmul.f32 0.01, %v3979_v63  ;;  %v1547_v43 = vsel %vm1291_vm2, %v3986_v6, %v1419_v25  ;;  %v1421_v25 = vmul.f32 0.01, %v4006_v23  ;;  %vm1363_vm2 = vcmp.ge.f32.partialorder %v4058_v57, 0.0 }
 0x143   :  { %v4087_v34 = vpop.f32.mrb[32].mxu1  ;;  %v4092_v15 = vpop.f32.mrb[32].mxu0 }
 0x144   :  { %v4096_v44 = vpop.f32.mrb[33].mxu1  ;;  %v4098_v19 = vpop.f32.mrb[33].mxu0  ;;  %v1548_v16 = vsel %vm1292_vm15, %v3979_v63, %v1420_v26  ;;  %v1611_v26 = vsel %vm1355_vm1, %v3984_v3, %v1483_v53  ;;  %vm1297_vm15 = vcmp.ge.f32.partialorder %v4040_v51, 0.0  ;;  %vm1364_vm1 = vcmp.ge.f32.partialorder %v4051_v60, 0.0 }
 0x145   :  { %v1683_v55 = vmul.f32 %v3859_v9, %v1548_v16  ;;  %v1746_v3 = vmul.f32 %v3859_v9, %v1611_v26 }
 0x146   :  { %2029 = vadd.xlane.f32.xlu1 %v2028_v37  ;;  %2026 = vadd.xlane.f32.xlu0 %v2025_v41  ;;  %v1745_v41 = vmul.f32 %v3859_v9, %v1610_v33 }
 0x147   :  { %v4105_v56 = vpop.f32.mrb[34].mxu1  ;;  %v4107_v58 = vpop.f32.mrb[34].mxu0  ;;  %v1854_v33 = vsel %vm1790_vm7, %v1683_v55, 0.0 }
 0x148   :  { %v4112_v59 = vpop.f32.mrb[35].mxu1  ;;  %v4116_v8 = vpop.f32.mrb[35].mxu0  ;;  %v2040_v24 = vsel %vm1790_vm7, %v1745_v41, 0.0 }
 0x14a   :  { %1843 = vadd.xlane.f32.xlu1 %v1842_v38  ;;  %1840 = vadd.xlane.f32.xlu0 %v1839_v14  ;;  %v1744_v38 = vmul.f32 %v3859_v9, %v1609_v52  ;;  %v1612_v14 = vsel %vm1356_vm0, %v3977_v62, %v1484_v47  ;;  %v1550_v47 = vsel %vm1294_vm3, %v4000_v4, %v1422_v10  ;;  %v1424_v10 = vmul.f32 0.01, %v4015_v30 }
 0x14b   :  { %v4123_v11 = vpop.f32.mrb[36].mxu0  ;;  %v4125_v12 = vpop.f32.mrb[36].mxu1  ;;  %v1747_v5 = vmul.f32 %v3859_v9, %v1612_v14  ;;  %v1682_v4 = vmul.f32 %v3859_v9, %v1547_v43  ;;  %vm1300_vm0 = vcmp.ge.f32.partialorder %v4053_v61, 0.0  ;;  %vm1299_vm3 = vcmp.ge.f32.partialorder %v4060_v7, 0.0 }
 0x14c   :  { %v4130_v18 = vpop.f32.mrb[37].mxu0  ;;  %v4132_v1 = vpop.f32.mrb[37].mxu1 }
 0x14d   :  { %v2046_v6 = vsel %vm1790_vm7, %v1747_v5, 0.0 }
 0x14e   :  { %2035 = vadd.xlane.f32.xlu1 %v2034_v28  ;;  %2032 = vadd.xlane.f32.xlu0 %v2031_v39  ;;  %v2037_v28 = vsel %vm1790_vm7, %v1744_v38, 0.0  ;;  %v1486_v39 = vmul.f32 0.01, %v3998_v17 }
 0x14f   :  { %v4144_v35 = vpop.f32.mrb[38].mxu0  ;;  %v4146_v32 = vpop.f32.mrb[38].mxu1 }
 0x150   :  { %v4150_v54 = vpop.f32.mrb[39].mxu0  ;;  %v4152_v37 = vpop.f32.mrb[39].mxu1  ;;  %v1614_v14 = vsel %vm1358_vm4, %v3998_v17, %v1486_v39  ;;  %vm1302_vm4 = vcmp.ge.f32.partialorder %v4074_v31, 0.0 }
 0x151   :  { %v1749_v43 = vmul.f32 %v3859_v9, %v1614_v14 }
 0x152   :  { %1849 = vadd.xlane.f32.xlu1 %v1848_v50  ;;  %1846 = vadd.xlane.f32.xlu0 %v1845_v20  ;;  %v1485_v50 = vmul.f32 0.01, %v4004_v22  ;;  %v1685_v20 = vmul.f32 %v3859_v9, %v1550_v47 }
 0x153   :  { %v4161_v2 = vpop.f32.mrb[40].mxu0  ;;  %v4169_v0 = vpop.f32.mrb[40].mxu1 }
 0x154   :  { %v4167_v63 = vpop.f32.mrb[41].mxu0  ;;  %v4174_v42 = vpop.f32.mrb[41].mxu1  ;;  %v1613_v26 = vsel %vm1357_vm5, %v4004_v22, %v1485_v50  ;;  %v1860_v47 = vsel %vm1790_vm7, %v1685_v20, 0.0  ;;  %v1552_v22 = vsel %vm1296_vm8, %v4015_v30, %v1424_v10  ;;  %v2052_v20 = vsel %vm1790_vm7, %v1749_v43, 0.0 }
 0x155   :  { %v1748_v50 = vmul.f32 %v3859_v9, %v1613_v26  ;;  %v1426_v10 = vmul.f32 0.01, %v4033_v46  ;;  %vm1366_vm5 = vcmp.ge.f32.partialorder %v4069_v13, 0.0  ;;  %vm1301_vm8 = vcmp.ge.f32.partialorder %v4080_v27, 0.0 }
 0x156   :  { %2041 = vadd.xlane.f32.xlu1 %v2040_v24  ;;  %2038 = vadd.xlane.f32.xlu0 %v2037_v28  ;;  %v2043_v24 = vsel %vm1790_vm7, %v1746_v3, 0.0  ;;  %v1488_v3 = vmul.f32 0.01, %v4013_v29 }
 0x157   :  { %v4180_v49 = vpop.f32.mrb[42].mxu0  ;;  %v4190_v52 = vpop.f32.mrb[42].mxu1  ;;  %v2049_v43 = vsel %vm1790_vm7, %v1748_v50, 0.0  ;;  %v1490_v50 = vmul.f32 0.01, %v4031_v45 }
 0x158   :  { %v4185_v62 = vpop.f32.mrb[43].mxu0  ;;  %v4194_v16 = vpop.f32.mrb[43].mxu1  ;;  %v1616_v26 = vsel %vm1360_vm9, %v4013_v29, %v1488_v3  ;;  %vm1304_vm9 = vcmp.ge.f32.partialorder %v4092_v15, 0.0 }
 0x15a   :  { %1855 = vadd.xlane.f32.xlu1 %v1854_v33  ;;  %2047 = vadd.xlane.f32.xlu0 %v2046_v6  ;;  %v1851_v33 = vsel %vm1790_vm7, %v1682_v4, 0.0  ;;  %v1549_v6 = vsel %vm1293_vm6, %v4006_v23, %v1421_v25  ;;  %v1487_v4 = vmul.f32 0.01, %v4022_v36  ;;  %v1423_v25 = vmul.f32 0.01, %v4027_v40 }
 0x15b   :  { %v4197_v41 = vpop.f32.mrb[44].mxu0  ;;  %v4199_v53 = vpop.f32.mrb[44].mxu1  ;;  %vm1365_vm6 = vcmp.ge.f32.partialorder %v4076_v21, 0.0 }
 0x15c   :  { %v4205_v38 = vpop.f32.mrb[45].mxu0  ;;  %v4207_v55 = vpop.f32.mrb[45].mxu1 }
 0x15e   :  { %2044 = vadd.xlane.f32.xlu1 %v2043_v24  ;;  %1852 = vadd.xlane.f32.xlu0 %v1851_v33  ;;  %v1684_v24 = vmul.f32 %v3859_v9, %v1549_v6  ;;  %v1687_v33 = vmul.f32 %v3859_v9, %v1552_v22  ;;  %v1615_v6 = vsel %vm1359_vm10, %v4022_v36, %v1487_v4  ;;  %vm1368_vm10 = vcmp.ge.f32.partialorder %v4087_v34, 0.0 }
 0x15f   :  { %v4218_v28 = vpop.f32.mrb[46].mxu0  ;;  %v4220_v5 = vpop.f32.mrb[46].mxu1  ;;  %v1554_v36 = vsel %vm1298_vm12, %v4033_v46, %v1426_v10  ;;  %v1750_v4 = vmul.f32 %v3859_v9, %v1615_v6  ;;  %v1425_v10 = vmul.f32 0.01, %v4040_v51  ;;  %v1428_v6 = vmul.f32 0.01, %v4053_v61 }
 0x160   :  { %v4225_v17 = vpop.f32.mrb[47].mxu0  ;;  %v4227_v39 = vpop.f32.mrb[47].mxu1  ;;  %v1866_v29 = vsel %vm1790_vm7, %v1687_v33, 0.0  ;;  %vm1303_vm12 = vcmp.ge.f32.partialorder %v4098_v19, 0.0 }
 0x162   :  { %1861 = vadd.xlane.f32.xlu1 %v1860_v47  ;;  %2053 = vadd.xlane.f32.xlu0 %v2052_v20 }
 0x163   :  { %v4235_v14 = vpop.f32.mrb[48].mxu1  ;;  %v4241_v23 = vpop.f32.mrb[48].mxu0 }
 0x164   :  { %5324 = vst [vmem:[#allocation12_spill] sm:$0xff] %v4241_v23  ;;  %v4243_v30 = vpop.f32.mrb[49].mxu1  ;;  %v4248_v47 = vpop.f32.mrb[49].mxu0  ;;  %v1857_v23 = vsel %vm1790_vm7, %v1684_v24, 0.0  ;;  %v1489_v24 = vmul.f32 0.01, %v4038_v48 }
 0x165   :  { %5325 = vst [vmem:[#allocation13_spill] sm:$0xff] %v4243_v30  ;;  %5326 = vst [vmem:[#allocation14_spill] sm:$0xff] %v4248_v47  ;;  %v1751_v30 = vmul.f32 %v3859_v9, %v1616_v26 }
 0x166   :  { %2050 = vadd.xlane.f32.xlu1 %v2049_v43  ;;  %1858 = vadd.xlane.f32.xlu0 %v1857_v23  ;;  %v1551_v43 = vsel %vm1295_vm11, %v4027_v40, %v1423_v25  ;;  %v1689_v40 = vmul.f32 %v3859_v9, %v1554_v36  ;;  %vm1367_vm11 = vcmp.ge.f32.partialorder %v4096_v44, 0.0 }
 0x167   :  { %v4254_v22 = vpop.f32.mrb[50].mxu1  ;;  %v4256_v20 = vpop.f32.mrb[50].mxu0  ;;  %v2058_v23 = vsel %vm1790_vm7, %v1751_v30, 0.0  ;;  %v1617_v30 = vsel %vm1361_vm14, %v4038_v48, %v1489_v24  ;;  %v1491_v24 = vmul.f32 0.01, %v4058_v57  ;;  %vm1306_vm14 = vcmp.ge.f32.partialorder %v4107_v58, 0.0 }
 0x168   :  { %v4261_v3 = vpop.f32.mrb[51].mxu1  ;;  %v4263_v47 = vpop.f32.mrb[51].mxu0 }
 0x169   :  { %5327 = vst [vmem:[#allocation15_spill] sm:$0xff] %v4263_v47  ;;  %v1686_v47 = vmul.f32 %v3859_v9, %v1551_v43 }
 0x16a   :  { %1867 = vadd.xlane.f32.xlu1 %v1866_v29  ;;  %2059 = vadd.xlane.f32.xlu0 %v2058_v23  ;;  %v1618_v29 = vsel %vm1362_vm13, %v4031_v45, %v1490_v50  ;;  %v1492_v50 = vmul.f32 0.01, %v4051_v60  ;;  %vm1370_vm13 = vcmp.ge.f32.partialorder %v4105_v56, 0.0 }
 0x16b   :  { %v4271_v26 = vpop.f32.mrb[52].mxu1  ;;  %v4273_v33 = vpop.f32.mrb[52].mxu0  ;;  %v1863_v36 = vsel %vm1790_vm7, %v1686_v47, 0.0  ;;  %v1753_v23 = vmul.f32 %v3859_v9, %v1618_v29  ;;  %v1752_v47 = vmul.f32 %v3859_v9, %v1617_v30  ;;  %v1427_v30 = vmul.f32 0.01, %v4060_v7 }
 0x16c   :  { %5328 = vst [vmem:[#allocation16_spill] sm:$0xff] %v4271_v26  ;;  %v4279_v46 = vpop.f32.mrb[53].mxu1  ;;  %v4281_v25 = vpop.f32.mrb[53].mxu0  ;;  %v2055_v26 = vsel %vm1790_vm7, %v1750_v4, 0.0  ;;  %v1553_v4 = vsel %vm1297_vm15, %v4040_v51, %v1425_v10  ;;  %vm1369_vm15 = vcmp.ge.f32.partialorder %v4112_v59, 0.0 }
 0x16d   :  { %5329 = vst [vmem:[#allocation17_spill] sm:$0xff] %v4279_v46  ;;  %5330 = vst [vmem:[#allocation18_spill] sm:$0xff] %v4281_v25  ;;  %v1872_v25 = vsel %vm1790_vm7, %v1689_v40, 0.0  ;;  %v1688_v51 = vmul.f32 %v3859_v9, %v1553_v4 }
 0x16e   :  { %2056 = vadd.xlane.f32.xlu1 %v2055_v26  ;;  %1864 = vadd.xlane.f32.xlu0 %v1863_v36  ;;  %v1556_v26 = vsel %vm1300_vm0, %v4053_v61, %v1428_v6  ;;  %v2064_v36 = vsel %vm1790_vm7, %v1753_v23, 0.0  ;;  %v1619_v23 = vsel %vm1363_vm2, %v4058_v57, %v1491_v24  ;;  %v1493_v24 = vmul.f32 0.01, %v4076_v21 }
 0x16f   :  { %v4290_v43 = vpop.f32.mrb[54].mxu1  ;;  %v4295_v46 = vpop.f32.mrb[54].mxu0  ;;  %v1691_v61 = vmul.f32 %v3859_v9, %v1556_v26  ;;  %vm1305_vm0 = vcmp.ge.f32.partialorder %v4116_v8, 0.0  ;;  %vm1307_vm2 = vcmp.ge.f32.partialorder %v4130_v18, 0.0 }
 0x170   :  { %v4297_v45 = vpop.f32.mrb[55].mxu1  ;;  %v4302_v48 = vpop.f32.mrb[55].mxu0 }
 0x172   :  { %1873 = vadd.xlane.f32.xlu1 %v1872_v25  ;;  %2065 = vadd.xlane.f32.xlu0 %v2064_v36  ;;  %v1430_v25 = vmul.f32 0.01, %v4074_v31  ;;  %v1869_v36 = vsel %vm1790_vm7, %v1688_v51, 0.0  ;;  %v1754_v51 = vmul.f32 %v3859_v9, %v1619_v23 }
 0x173   :  { %v4307_v40 = vpop.f32.mrb[56].mxu1  ;;  %v4309_v29 = vpop.f32.mrb[56].mxu0 }
 0x174   :  { %5331 = vst [vmem:[#allocation19_spill] sm:$0xff] %v4307_v40  ;;  %5332 = vst [vmem:[#allocation20_spill] sm:$0xff] %v4309_v29  ;;  %v4315_v10 = vpop.f32.mrb[57].mxu1  ;;  %v4317_v6 = vpop.f32.mrb[57].mxu0  ;;  %v1620_v40 = vsel %vm1364_vm1, %v4051_v60, %v1492_v50  ;;  %v2061_v29 = vsel %vm1790_vm7, %v1752_v47, 0.0  ;;  %v1558_v57 = vsel %vm1302_vm4, %v4074_v31, %v1430_v25  ;;  %vm1308_vm1 = vcmp.ge.f32.partialorder %v4123_v11, 0.0 }
 0x175   :  { %5333 = vst [vmem:[#allocation21_spill] sm:$0xff] %v4315_v10  ;;  %5334 = vst [vmem:[#allocation22_spill] sm:$0xff] %v4317_v6  ;;  %v1755_v6 = vmul.f32 %v3859_v9, %v1620_v40  ;;  %v1878_v10 = vsel %vm1790_vm7, %v1691_v61, 0.0  ;;  %v1494_v47 = vmul.f32 0.01, %v4069_v13  ;;  %v1693_v31 = vmul.f32 %v3859_v9, %v1558_v57 }
 0x176   :  { %2062 = vadd.xlane.f32.xlu1 %v2061_v29  ;;  %1870 = vadd.xlane.f32.xlu0 %v1869_v36  ;;  %v1555_v29 = vsel %vm1299_vm3, %v4060_v7, %v1427_v30  ;;  %v1429_v40 = vmul.f32 0.01, %v4080_v27  ;;  %vm1371_vm3 = vcmp.ge.f32.partialorder %v4132_v1, 0.0  ;;  %vm1372_vm4 = vcmp.ge.f32.partialorder %v4125_v12, 0.0 }
 0x177   :  { %v4326_v4 = vpop.f32.mrb[58].mxu1  ;;  %v4328_v26 = vpop.f32.mrb[58].mxu0  ;;  %v1690_v7 = vmul.f32 %v3859_v9, %v1555_v29  ;;  %v1622_v23 = vsel %vm1366_vm5, %v4069_v13, %v1494_v47  ;;  %v1884_v47 = vsel %vm1790_vm7, %v1693_v31, 0.0  ;;  %v1498_v31 = vmul.f32 0.01, %v4105_v56 }
 0x178   :  { %v4333_v60 = vpop.f32.mrb[59].mxu1  ;;  %v4335_v50 = vpop.f32.mrb[59].mxu0  ;;  %v1557_v29 = vsel %vm1301_vm8, %v4080_v27, %v1429_v40  ;;  %v1757_v13 = vmul.f32 %v3859_v9, %v1622_v23  ;;  %v1434_v23 = vmul.f32 0.01, %v4107_v58  ;;  %vm1310_vm5 = vcmp.ge.f32.partialorder %v4144_v35, 0.0 }
 0x179   :  { %5335 = vst [vmem:[#allocation23_spill] sm:$0xff] %v4335_v50  ;;  %v2070_v50 = vsel %vm1790_vm7, %v1755_v6, 0.0  ;;  %v1621_v6 = vsel %vm1365_vm6, %v4076_v21, %v1493_v24  ;;  %v1495_v21 = vmul.f32 0.01, %v4096_v44  ;;  %vm1374_vm6 = vcmp.ge.f32.partialorder %v4146_v32, 0.0 }
 0x17a   :  { %1879 = vadd.xlane.f32.xlu1 %v1878_v10  ;;  %2071 = vadd.xlane.f32.xlu0 %v2070_v50  ;;  %v1432_v10 = vmul.f32 0.01, %v4092_v15  ;;  %v1756_v27 = vmul.f32 %v3859_v9, %v1621_v6  ;;  %vm1309_vm8 = vcmp.ge.f32.partialorder %v4150_v54, 0.0 }
 0x17b   :  { %v4345_v61 = vpop.f32.mrb[60].mxu1  ;;  %v4347_v36 = vpop.f32.mrb[60].mxu0 }
 0x17c   :  { %5336 = vst [vmem:[#allocation24_spill] sm:$0xff] %v4345_v61  ;;  %5337 = vst [vmem:[#allocation25_spill] sm:$0xff] %v4347_v36  ;;  %v4353_v30 = vpop.f32.mrb[61].mxu1  ;;  %v4355_v25 = vpop.f32.mrb[61].mxu0  ;;  %v2067_v61 = vsel %vm1790_vm7, %v1754_v51, 0.0  ;;  %v1560_v24 = vsel %vm1304_vm9, %v4092_v15, %v1432_v10  ;;  %v2073_v6 = vsel %vm1790_vm7, %v1756_v27, 0.0  ;;  %v1626_v27 = vsel %vm1370_vm13, %v4105_v56, %v1498_v31 }
 0x17d   :  { %5338 = vst [vmem:[#allocation26_spill] sm:$0xff] %v4353_v30  ;;  %5339 = vst [vmem:[#allocation27_spill] sm:$0xff] %v4355_v25  ;;  %v1875_v25 = vsel %vm1790_vm7, %v1690_v7, 0.0  ;;  %v1496_v30 = vmul.f32 0.01, %v4087_v34  ;;  %v1692_v7 = vmul.f32 %v3859_v9, %v1557_v29  ;;  %v1623_v29 = vsel %vm1367_vm11, %v4096_v44, %v1495_v21 }
 0x17e   :  { %2068 = vadd.xlane.f32.xlu1 %v2067_v61  ;;  %1876 = vadd.xlane.f32.xlu0 %v1875_v25  ;;  %v1431_v61 = vmul.f32 0.01, %v4098_v19  ;;  %v2076_v25 = vsel %vm1790_vm7, %v1757_v13, 0.0  ;;  %v4395_v10 = vld [vmem:[%s5296_s2] ss:$0 sm:$0xff]  ;;  %vm1373_vm9 = vcmp.ge.f32.partialorder %v4152_v37, 0.0 }
 0x17f   :  { %v4367_v57 = vpop.f32.mrb[62].mxu0  ;;  %v4369_v50 = vpop.f32.mrb[62].mxu1  ;;  %v1624_v15 = vsel %vm1368_vm10, %v4087_v34, %v1496_v30  ;;  %v1695_v9 = vmul.f32 %v4395_v10, %v1560_v24  ;;  %v1881_v13 = vsel %vm1790_vm7, %v1692_v7, 0.0  ;;  %v1436_v24 = vmul.f32 0.01, %v4123_v11 }
 0x180   :  { %5340 = vst [vmem:[#allocation28_spill] sm:$0xff] %v4367_v57  ;;  %5341 = vst [vmem:[#allocation29_spill] sm:$0xff] %v4369_v50  ;;  %v4375_v51 = vpop.f32.mrb[63].mxu0  ;;  %v4381_v40 = vpop.f32.mrb[63].mxu1  ;;  %v1559_v34 = vsel %vm1303_vm12, %v4098_v19, %v1431_v61  ;;  %v1759_v30 = vmul.f32 %v4395_v10, %v1624_v15  ;;  %v1758_v21 = vmul.f32 %v4395_v10, %v1623_v29  ;;  %v1497_v19 = vmul.f32 0.01, %v4112_v59 }
 0x181   :  { %5342 = vst [vmem:[#allocation30_spill] sm:$0xff] %v4375_v51  ;;  %5343 = vst [vmem:[#allocation31_spill] sm:$0xff] %v4381_v40  ;;  %v1890_v44 = vsel %vm1790_vm7, %v1695_v9, 0.0  ;;  %v1562_v7 = vsel %vm1306_vm14, %v4107_v58, %v1434_v23  ;;  %v1694_v61 = vmul.f32 %v4395_v10, %v1559_v34  ;;  %v1499_v15 = vmul.f32 0.01, %v4132_v1 }
 0x182   :  { %1885 = vadd.xlane.f32.xlu1 %v1884_v47  ;;  %2077 = vadd.xlane.f32.xlu0 %v2076_v25  ;;  %v1433_v47 = vmul.f32 0.01, %v4116_v8  ;;  %v2433_v25 = vlaneseq  ;;  %v1435_v56 = vmul.f32 0.01, %v4130_v18  ;;  %v1761_v31 = vmul.f32 %v4395_v10, %v1626_v27 }
 0x183   :  { %v2082_v58 = vsel %vm1790_vm7, %v1759_v30, 0.0  ;;  %v1697_v23 = vmul.f32 %v4395_v10, %v1562_v7  ;;  %v1500_v29 = vmul.f32 0.01, %v4125_v12  ;;  %v1887_v30 = vsel %vm1790_vm7, %v1694_v61, 0.0 }
 0x184   :  { %v1561_v9 = vsel %vm1305_vm0, %v4116_v8, %v1433_v47  ;;  %v4431_v34 = vand.u32 127, %v2433_v25  ;;  %v1625_v27 = vsel %vm1369_vm15, %v4112_v59, %v1497_v19  ;;  %v2088_v8 = vsel %vm1790_vm7, %v1761_v31, 0.0 }
 0x185   :  { %v1438_v47 = vmul.f32 0.01, %v4144_v35  ;;  %v4445_v61 = vshrl.u32 %v2433_v25, 7  ;;  %v4456_v31 = vstv %s5297_s3  ;;  %v1502_v25 = vmul.f32 0.01, %v4146_v32 }
 0x186   :  { %2074 = vadd.xlane.f32.xlu1 %v2073_v6  ;;  %1882 = vadd.xlane.f32.xlu0 %v1881_v13  ;;  %v2079_v6 = vsel %vm1790_vm7, %v1758_v21, 0.0  ;;  %v1564_v13 = vsel %vm1308_vm1, %v4123_v11, %v1436_v24  ;;  %v1696_v21 = vmul.f32 %v4395_v10, %v1561_v9  ;;  %v1437_v11 = vmul.f32 0.01, %v4150_v54 }
 0x187   :  { %v1896_v24 = vsel %vm1790_vm7, %v1697_v23, 0.0  ;;  %v1699_v7 = vmul.f32 %v4395_v10, %v1564_v13  ;;  %v2439_v59 = vadd.s32 4294967288, %v4431_v34  ;;  %v1440_v23 = vmul.f32 0.01, %v4161_v2 }
 0x188   :  { %v1893_v9 = vsel %vm1790_vm7, %v1696_v21, 0.0  ;;  %vm1312_vm10 = vcmp.ge.f32.partialorder %v4161_v2, 0.0  ;;  %vm1376_vm11 = vcmp.ge.f32.partialorder %v4169_v0, 0.0  ;;  %vm1375_vm12 = vcmp.ge.f32.partialorder %v4174_v42, 0.0 }
 0x189   :  { %v1902_v13 = vsel %vm1790_vm7, %v1699_v7, 0.0  ;;  %v4479_v21 = vsub.s32 %v2439_v59, %v4445_v61  ;;  %vm2444_vm13 = vcmask 130112   ;;  %vm1314_vm14 = vcmp.ge.f32.partialorder %v4180_v49, 0.0 }
 0x18a   :  { %1891 = vadd.xlane.f32.xlu1 %v1890_v44  ;;  %2083 = vadd.xlane.f32.xlu0 %v2082_v58  ;;  %v1627_v44 = vsel %vm1371_vm3, %v4132_v1, %v1499_v15  ;;  %v1760_v1 = vmul.f32 %v4395_v10, %v1625_v27  ;;  %v2453_v15 = vadd.s32 4294967272, %v4431_v34  ;;  %v1501_v58 = vmul.f32 0.01, %v4152_v37 }
 0x18b   :  { %v1762_v19 = vmul.f32 %v4395_v10, %v1627_v44  ;;  %v1566_v27 = vsel %vm1310_vm5, %v4144_v35, %v1438_v47  ;;  %v1563_v44 = vsel %vm1307_vm2, %v4130_v18, %v1435_v56  ;;  %v1630_v35 = vsel %vm1374_vm6, %v4146_v32, %v1502_v25 }
 0x18c   :  { %v1629_v40 = vsel %vm1373_vm9, %v4152_v37, %v1501_v58  ;;  %v1568_v18 = vsel %vm1312_vm10, %v4161_v2, %v1440_v23  ;;  %v1701_v56 = vmul.f32 %v4395_v10, %v1566_v27  ;;  %v1504_v47 = vmul.f32 0.01, %v4169_v0 }
 0x18d   :  { %v1698_v59 = vmul.f32 %v4395_v10, %v1563_v44  ;;  %v1503_v37 = vmul.f32 0.01, %v4174_v42  ;;  %v1764_v2 = vmul.f32 %v4395_v10, %v1629_v40  ;;  %vm1311_vm15 = vcmp.ge.f32.partialorder %v4167_v63, 0.0 }
 0x18e   :  { %2080 = vadd.xlane.f32.xlu1 %v2079_v6  ;;  %1888 = vadd.xlane.f32.xlu0 %v1887_v30  ;;  %v1628_v6 = vsel %vm1372_vm4, %v4125_v12, %v1500_v29  ;;  %v4470_v30 = vsub.s32 %v4431_v34, %v4445_v61  ;;  %v2085_v12 = vsel %vm1790_vm7, %v1760_v1, 0.0  ;;  %v2091_v29 = vsel %vm1790_vm7, %v1762_v19, 0.0 }
 0x18f   :  { %v1763_v7 = vmul.f32 %v4395_v10, %v1628_v6  ;;  %v2446_v1 = vadd.s32 4294967280, %v4431_v34  ;;  %v1765_v19 = vmul.f32 %v4395_v10, %v1630_v35  ;;  %v1439_v25 = vmul.f32 0.01, %v4167_v63 }
 0x190   :  { %v2467_v58 = vadd.s32 4294967256, %v4431_v34  ;;  %v2460_v23 = vadd.s32 4294967264, %v4431_v34  ;;  %v1908_v40 = vsel %vm1790_vm7, %v1701_v56, 0.0  ;;  %v1899_v27 = vsel %vm1790_vm7, %v1698_v59, 0.0 }
 0x191   :  { %v4512_v44 = vsub.s32 %v2446_v1, %v4445_v61  ;;  %v1631_v35 = vsel %vm1375_vm12, %v4174_v42, %v1503_v37  ;;  %v2097_v59 = vsel %vm1790_vm7, %v1764_v2, 0.0  ;;  %vm1378_vm0 = vcmp.ge.f32.partialorder %v4190_v52, 0.0 }
 0x192   :  { %1897 = vadd.xlane.f32.xlu1 %v1896_v24  ;;  %v4484_v24 = vsub.s32 %v2453_v15, %v4445_v61  ;;  %2089 = vadd.xlane.f32.xlu0 %v2088_v8  ;;  %v1442_v8 = vmul.f32 0.01, %v4180_v49  ;;  %v1703_v15 = vmul.f32 %v4395_v10, %v1568_v18  ;;  %vm2451_vm1 = vcmask 195712  }
 0x193   :  { %v1766_v37 = vmul.f32 %v4395_v10, %v1631_v35  ;;  %vm2458_vm2 = vcmask 261312   ;;  %vm1377_vm3 = vcmp.ge.f32.partialorder %v4194_v16, 0.0  ;;  %vm1316_vm4 = vcmp.ge.f32.partialorder %v4197_v41, 0.0 }
 0x194   :  { %v1570_v18 = vsel %vm1314_vm14, %v4180_v49, %v1442_v8  ;;  %vm1313_vm5 = vcmp.ge.f32.partialorder %v4185_v62, 0.0  ;;  %vm2465_vm6 = vcmask 326912   ;;  %vm2472_vm9 = vcmask 392512  }
 0x195   :  { %v1705_v2 = vmul.f32 %v4395_v10, %v1570_v18  ;;  %v4558_v18 = vmul.f32 0.01, %v4205_v38  ;;  %v2103_v51 = vsel %vm1790_vm7, %v1766_v37, 0.0  ;;  %vm1379_vm10 = vcmp.ge.f32.partialorder %v4207_v55, 0.0 }
 0x196   :  { %1903 = vadd.xlane.f32.xlu1 %v1902_v13  ;;  %1894 = vadd.xlane.f32.xlu0 %v1893_v9  ;;  %v2094_v13 = vsel %vm1790_vm7, %v1763_v7, 0.0  ;;  %v1565_v9 = vsel %vm1309_vm8, %v4150_v54, %v1437_v11  ;;  %v1632_v7 = vsel %vm1376_vm11, %v4169_v0, %v1504_v47  ;;  %v1914_v54 = vsel %vm1790_vm7, %v1703_v15, 0.0 }
 0x197   :  { %v1988_v32 = vpop.xlane.xlu1 %1987  ;;  %v1796_v6 = vpop.xlane.xlu0 %1795  ;;  %v4532_v11 = vmul.f32 0.01, %v4185_v62  ;;  %v4536_v0 = vsub.s32 %v2467_v58, %v4445_v61  ;;  %v4539_v47 = vsub.s32 %v2460_v23, %v4445_v61  ;;  %v1700_v1 = vmul.f32 %v4395_v10, %v1565_v9 }
 0x198   :  { %v2178_v42 = vadd.f32 %v4456_v31, %v1796_v6  ;;  %v1767_v8 = vmul.f32 %v4395_v10, %v1632_v7  ;;  %v2481_v15 = vadd.s32 4294967240, %v4431_v34  ;;  %v1505_v23 = vmul.f32 0.01, %v4194_v16 }
 0x199   :  { %v1444_v6 = vmul.f32 0.01, %v4197_v41  ;;  %v2474_v9 = vadd.s32 4294967248, %v4431_v34  ;;  %v2242_v35 = vadd.f32 %v4456_v31, %v1988_v32  ;;  %v1905_v50 = vsel %vm1790_vm7, %v1700_v1, 0.0 }
 0x19a   :  { %2092 = vadd.xlane.f32.xlu1 %v2091_v29  ;;  %v4528_v29 = vsel %vm1790_vm7, %v1765_v19, 0.0  ;;  %2086 = vadd.xlane.f32.xlu0 %v2085_v12  ;;  %v1506_v19 = vmul.f32 0.01, %v4190_v52  ;;  %v4563_v57 = vsel %vm1790_vm7, %v1767_v8, 0.0  ;;  %v4566_v36 = vsel %vm1790_vm7, %v1705_v2, 0.0 }
 0x19b   :  { %v1802_v56 = vpop.xlane.xlu1 %1801  ;;  %v1793_v49 = vpop.xlane.xlu0 %1792  ;;  %v1567_v1 = vsel %vm1311_vm15, %v4167_v63, %v1439_v25  ;;  %v4579_v2 = vsub.s32 %v2474_v9, %v4445_v61  ;;  %vm1380_vm8 = vcmp.ge.f32.partialorder %v4199_v53, 0.0  ;;  %v1633_v63 = vsel %vm1377_vm3, %v4194_v16, %v1505_v23 }
 0x19c   :  { %v2177_v12 = vadd.f32 %v4456_v31, %v1793_v49  ;;  %v2180_v37 = vadd.f32 %v4456_v31, %v1802_v56  ;;  %v1702_v9 = vmul.f32 %v4395_v10, %v1567_v1  ;;  %v1572_v16 = vsel %vm1316_vm4, %v4197_v41, %v1444_v6 }
 0x19d   :  { %v1768_v1 = vmul.f32 %v4395_v10, %v1633_v63  ;;  %vm1318_vm11 = vcmp.ge.f32.partialorder %v4218_v28, 0.0  ;;  %vm1315_vm12 = vcmp.ge.f32.partialorder %v4205_v38, 0.0  ;;  %vm2479_vm14 = vcmask 458112  }
 0x19e   :  { %1909 = vadd.xlane.f32.xlu1 %v1908_v40  ;;  %v2443_v40 = vrot.slane %v2178_v42, %v4479_v21  ;;  %v2438_v7 = vrot.slane %v2177_v12, %v4470_v30  ;;  %2095 = vadd.xlane.f32.xlu0 %v2094_v13  ;;  %v4572_v13 = vsub.s32 %v2481_v15, %v4445_v61  ;;  %vm2486_vm15 = vcmask 523712  }
 0x19f   :  { %v1994_v58 = vpop.xlane.xlu1 %1993  ;;  %v1985_v49 = vpop.xlane.xlu0 %1984  ;;  %v2788_v12 = vrot.slane %v2242_v35, %v4479_v21  ;;  %v1634_v35 = vsel %vm1378_vm0, %v4190_v52, %v1506_v19  ;;  %vm1317_vm0 = vcmp.ge.f32.partialorder %v4225_v17, 0.0  ;;  %vm1382_vm3 = vcmp.ge.f32.partialorder %v4220_v5, 0.0 }
 0x1a0   :  { %v2445_v32 = vsel %vm2444_vm13, %v2443_v40, %v2438_v7  ;;  %v2241_v42 = vadd.f32 %v4456_v31, %v1985_v49  ;;  %v2244_v25 = vadd.f32 %v4456_v31, %v1994_v58  ;;  %v2457_v58 = vrot.slane %v2180_v37, %v4484_v24 }
 0x1a1   :  { %vm5319_vm4 = vcmask 589312  }
 0x1a2   :  { %2098 = vadd.xlane.f32.xlu1 %v2097_v59  ;;  %v1508_v59 = vmul.f32 0.01, %v4199_v53  ;;  %v2784_v15 = vrot.slane %v2241_v42, %v4470_v30  ;;  %1900 = vadd.xlane.f32.xlu0 %v1899_v27  ;;  %v1507_v42 = vmul.f32 0.01, %v4207_v55  ;;  %v2798_v41 = vrot.slane %v2244_v25, %v4484_v24 }
 0x1a3   :  { %v1799_v8 = vpop.xlane.xlu1 %1798  ;;  %v1991_v56 = vpop.xlane.xlu0 %1990 }
 0x1a4   :  { %v2179_v40 = vadd.f32 %v4456_v31, %v1799_v8  ;;  %v2789_v27 = vsel %vm2444_vm13, %v2788_v12, %v2784_v15  ;;  %v2243_v7 = vadd.f32 %v4456_v31, %v1991_v56  ;;  %v1446_v8 = vmul.f32 0.01, %v4218_v28 }
 0x1a5   :  { %v1769_v12 = vmul.f32 %v4395_v10, %v1634_v35  ;;  %v1707_v15 = vmul.f32 %v4395_v10, %v1572_v16  ;;  %v2109_v35 = vsel %vm1790_vm7, %v1768_v1, 0.0  ;;  %v1569_v1 = vsel %vm1313_vm5, %v4185_v62, %v4532_v11 }
 0x1a6   :  { %v2450_v49 = vrot.slane %v2179_v40, %v4512_v44  ;;  %1915 = vadd.xlane.f32.xlu1 %v1914_v54  ;;  %v2793_v52 = vrot.slane %v2243_v7, %v4512_v44  ;;  %2101 = vadd.xlane.f32.xlu0 %v4528_v29  ;;  %v1911_v29 = vsel %vm1790_vm7, %v1702_v9, 0.0  ;;  %v2488_v9 = vadd.s32 4294967232, %v4431_v34 }
 0x1a7   :  { %v1808_v23 = vpop.xlane.xlu1 %1807  ;;  %v1805_v37 = vpop.xlane.xlu0 %1804  ;;  %vm1381_vm5 = vcmp.ge.f32.partialorder %v4227_v39, 0.0 }
 0x1a8   :  { %v2452_v19 = vsel %vm2451_vm1, %v2450_v49, %v2445_v32  ;;  %v2182_v54 = vadd.f32 %v4456_v31, %v1808_v23  ;;  %v2794_v40 = vsel %vm2451_vm1, %v2793_v52, %v2789_v27  ;;  %v2181_v63 = vadd.f32 %v4456_v31, %v1805_v37 }
 0x1a9   :  { %v2459_v6 = vsel %vm2458_vm2, %v2457_v58, %v2452_v19  ;;  %v4618_v32 = vmul.f32 0.01, %v4225_v17  ;;  %v2799_v7 = vsel %vm2458_vm2, %v2798_v41, %v2794_v40  ;;  %v2495_v27 = vadd.s32 4294967224, %v4431_v34 }
 0x1aa   :  { %2104 = vadd.xlane.f32.xlu1 %v2103_v51  ;;  %v2471_v56 = vrot.slane %v2182_v54, %v4536_v0  ;;  %v2464_v49 = vrot.slane %v2181_v63, %v4539_v47  ;;  %1906 = vadd.xlane.f32.xlu0 %v1905_v50  ;;  %v2112_v58 = vsel %vm1790_vm7, %v1769_v12, 0.0  ;;  %v1926_v23 = vsel %vm1790_vm7, %v1707_v15, 0.0 }
 0x1ab   :  { %v2000_v25 = vpop.xlane.xlu1 %1999  ;;  %v1997_v16 = vpop.xlane.xlu0 %1996  ;;  %v1635_v52 = vsel %vm1379_vm10, %v4207_v55, %v1507_v42  ;;  %v1636_v54 = vsel %vm1380_vm8, %v4199_v53, %v1508_v59  ;;  %v1574_v41 = vsel %vm1318_vm11, %v4218_v28, %v1446_v8  ;;  %v4650_v55 = vsub.s32 %v2495_v27, %v4445_v61 }
 0x1ac   :  { %v2246_v51 = vadd.f32 %v4456_v31, %v2000_v25  ;;  %v2466_v50 = vsel %vm2465_vm6, %v2464_v49, %v2459_v6  ;;  %v2245_v19 = vadd.f32 %v4456_v31, %v1997_v16  ;;  %v1704_v28 = vmul.f32 %v4395_v10, %v1569_v1 }
 0x1ad   :  { %v2473_v37 = vsel %vm2472_vm9, %v2471_v56, %v2466_v50  ;;  %v1770_v59 = vmul.f32 %v4395_v10, %v1635_v52  ;;  %v1771_v8 = vmul.f32 %v4395_v10, %v1636_v54  ;;  %v1709_v6 = vmul.f32 %v4395_v10, %v1574_v41 }
 0x1ae   :  { %1921 = vadd.xlane.f32.xlu1 %v4566_v36  ;;  %v2808_v62 = vrot.slane %v2246_v51, %v4536_v0  ;;  %v2803_v36 = vrot.slane %v2245_v19, %v4539_v47  ;;  %2107 = vadd.xlane.f32.xlu0 %v4563_v57  ;;  %v2509_v12 = vadd.s32 4294967208, %v4431_v34  ;;  %v2502_v15 = vadd.s32 4294967216, %v4431_v34 }
 0x1af   :  { %v1814_v11 = vpop.xlane.xlu1 %1813  ;;  %v1811_v42 = vpop.xlane.xlu0 %1810  ;;  %v4665_v57 = vsub.s32 %v2488_v9, %v4445_v61  ;;  %v1510_v56 = vmul.f32 0.01, %v4220_v5  ;;  %v1509_v51 = vmul.f32 0.01, %v4227_v39  ;;  %v1917_v9 = vsel %vm1790_vm7, %v1704_v28, 0.0 }
 0x1b0   :  { %v2184_v53 = vadd.f32 %v4456_v31, %v1814_v11  ;;  %v2804_v40 = vsel %vm2465_vm6, %v2803_v36, %v2799_v7  ;;  %v2183_v63 = vadd.f32 %v4456_v31, %v1811_v42  ;;  %v2115_v16 = vsel %vm1790_vm7, %v1770_v59, 0.0  ;;  %v5344_v42 = vld [vmem:[#allocation13_spill] sm:$0xff] }
 0x1b1   :  { %v2809_v49 = vsel %vm2472_vm9, %v2808_v62, %v2804_v40  ;;  %vm5322_vm8 = vcmask 654912   ;;  %v2118_v52 = vsel %vm1790_vm7, %v1771_v8, 0.0  ;;  %v1932_v50 = vsel %vm1790_vm7, %v1709_v6, 0.0 }
 0x1b2   :  { %2110 = vadd.xlane.f32.xlu1 %v2109_v35  ;;  %v2485_v25 = vrot.slane %v2184_v53, %v4572_v13  ;;  %v2478_v7 = vrot.slane %v2183_v63, %v4579_v2  ;;  %1912 = vadd.xlane.f32.xlu0 %v1911_v29  ;;  %v4679_v19 = vsub.s32 %v2509_v12, %v4445_v61  ;;  %vm1384_vm10 = vcmp.ge.f32.partialorder %v4235_v14, 0.0  ;;  %v5345_v12 = vld [vmem:[#allocation14_spill] sm:$0xff] }
 0x1b3   :  { %v2006_v27 = vpop.xlane.xlu1 %2005  ;;  %v2003_v1 = vpop.xlane.xlu0 %2002  ;;  %v4682_v54 = vsub.s32 %v2502_v15, %v4445_v61  ;;  %v1571_v62 = vsel %vm1315_vm12, %v4205_v38, %v4558_v18  ;;  %v1638_v11 = vsel %vm1382_vm3, %v4220_v5, %v1510_v56  ;;  %vm1383_vm11 = vcmp.ge.f32.partialorder %v5344_v42, 0.0 }
 0x1b4   :  { %v2248_v35 = vadd.f32 %v4456_v31, %v2006_v27  ;;  %v2480_v29 = vsel %vm2479_vm14, %v2478_v7, %v2473_v37  ;;  %v2247_v41 = vadd.f32 %v4456_v31, %v2003_v1  ;;  %v1512_v37 = vmul.f32 0.01, %v4235_v14 }
 0x1b5   :  { %v2487_v28 = vsel %vm2486_vm15, %v2485_v25, %v2480_v29  ;;  %v1637_v38 = vsel %vm1381_vm5, %v4227_v39, %v1509_v51  ;;  %v1511_v18 = vmul.f32 0.01, %v5344_v42  ;;  %v1706_v8 = vmul.f32 %v4395_v10, %v1571_v62 }
 0x1b6   :  { %1927 = vadd.xlane.f32.xlu1 %v1926_v23  ;;  %v2818_v36 = vrot.slane %v2248_v35, %v4572_v13  ;;  %v2813_v23 = vrot.slane %v2247_v41, %v4579_v2  ;;  %2113 = vadd.xlane.f32.xlu0 %v2112_v58  ;;  %v1773_v6 = vmul.f32 %v4395_v10, %v1638_v11  ;;  %vm1319_vm12 = vcmp.ge.f32.partialorder %v5345_v12, 0.0  ;;  %v5346_v35 = vld [vmem:[#allocation12_spill] sm:$0xff] }
 0x1b7   :  { %v1820_v53 = vpop.xlane.xlu1 %1819  ;;  %v1817_v5 = vpop.xlane.xlu0 %1816  ;;  %v1447_v40 = vmul.f32 0.01, %v5345_v12  ;;  %v1573_v39 = vsel %vm1317_vm0, %v4225_v17, %v4618_v32  ;;  %vm5321_vm3 = vcmask 720512   ;;  %v1772_v27 = vmul.f32 %v4395_v10, %v1637_v38 }
 0x1b8   :  { %v2186_v59 = vadd.f32 %v4456_v31, %v1820_v53  ;;  %v2814_v15 = vsel %vm2479_vm14, %v2813_v23, %v2809_v49  ;;  %v2185_v58 = vadd.f32 %v4456_v31, %v1817_v5  ;;  %v2523_v49 = vadd.s32 4294967192, %v4431_v34 }
 0x1b9   :  { %v2819_v25 = vsel %vm2486_vm15, %v2818_v36, %v2814_v15  ;;  %vm1320_vm5 = vcmp.ge.f32.partialorder %v5346_v35, 0.0  ;;  %v1639_v32 = vsel %vm1383_vm11, %v5344_v42, %v1511_v18  ;;  %v1923_v1 = vsel %vm1790_vm7, %v1706_v8, 0.0 }
 0x1ba   :  { %2116 = vadd.xlane.f32.xlu1 %v2115_v16  ;;  %v2499_v63 = vrot.slane %v2186_v59, %v4650_v55  ;;  %v2492_v51 = vrot.slane %v2185_v58, %v4665_v57  ;;  %1918 = vadd.xlane.f32.xlu0 %v1917_v9  ;;  %v1448_v16 = vmul.f32 0.01, %v5346_v35  ;;  %v1708_v29 = vmul.f32 %v4395_v10, %v1573_v39 }
 0x1bb   :  { %v2012_v56 = vpop.xlane.xlu1 %2011  ;;  %v2009_v17 = vpop.xlane.xlu0 %2008  ;;  %v2516_v41 = vadd.s32 4294967200, %v4431_v34  ;;  %v2124_v11 = vsel %vm1790_vm7, %v1773_v6, 0.0  ;;  %v1575_v36 = vsel %vm1319_vm12, %v5345_v12, %v1447_v40  ;;  %v2121_v42 = vsel %vm1790_vm7, %v1772_v27, 0.0 }
 0x1bc   :  { %v2250_v7 = vadd.f32 %v4456_v31, %v2012_v56  ;;  %v2494_v62 = vsel %vm5319_vm4, %v2492_v51, %v2487_v28  ;;  %v2249_v9 = vadd.f32 %v4456_v31, %v2009_v17  ;;  %v4738_v38 = vsub.s32 %v2523_v49, %v4445_v61 }
 0x1bd   :  { %v2501_v59 = vsel %vm5322_vm8, %v2499_v63, %v2494_v62  ;;  %vm5320_vm0 = vcmask 786112   ;;  %v1576_v5 = vsel %vm1320_vm5, %v5346_v35, %v1448_v16  ;;  %v1929_v8 = vsel %vm1790_vm7, %v1708_v29, 0.0  ;;  %v5347_v35 = vld [vmem:[#allocation15_spill] sm:$0xff] }
 0x1be   :  { %1933 = vadd.xlane.f32.xlu1 %v1932_v50  ;;  %v2828_v53 = vrot.slane %v2250_v7, %v4650_v55  ;;  %v2823_v28 = vrot.slane %v2249_v9, %v4665_v57  ;;  %2119 = vadd.xlane.f32.xlu0 %v2118_v52  ;;  %v4747_v6 = vsub.s32 %v2516_v41, %v4445_v61  ;;  %vm1386_vm11 = vcmp.ge.f32.partialorder %v4254_v22, 0.0 }
 0x1bf   :  { %v1826_v23 = vpop.xlane.xlu1 %1825  ;;  %v1823_v18 = vpop.xlane.xlu0 %1822  ;;  %v1514_v12 = vmul.f32 0.01, %v4254_v22  ;;  %vm1322_vm12 = vcmp.ge.f32.partialorder %v4256_v20, 0.0  ;;  %v1640_v58 = vsel %vm1384_vm10, %v4235_v14, %v1512_v37  ;;  %vm2521_vm5 = vcmask 851712  }
 0x1c0   :  { %v2188_v50 = vadd.f32 %v4456_v31, %v1826_v23  ;;  %v2824_v15 = vsel %vm5319_vm4, %v2823_v28, %v2819_v25  ;;  %v2187_v52 = vadd.f32 %v4456_v31, %v1823_v18  ;;  %v1450_v56 = vmul.f32 0.01, %v4256_v20 }
 0x1c1   :  { %v2829_v63 = vsel %vm5322_vm8, %v2828_v53, %v2824_v15  ;;  %v1711_v27 = vmul.f32 %v4395_v10, %v1576_v5  ;;  %vm1385_vm4 = vcmp.ge.f32.partialorder %v4261_v3, 0.0  ;;  %v1513_v51 = vmul.f32 0.01, %v4261_v3 }
 0x1c2   :  { %2125 = vadd.xlane.f32.xlu1 %v2124_v11  ;;  %v2513_v40 = vrot.slane %v2188_v50, %v4679_v19  ;;  %v2506_v25 = vrot.slane %v2187_v52, %v4682_v54  ;;  %1924 = vadd.xlane.f32.xlu0 %v1923_v1  ;;  %v1642_v37 = vsel %vm1386_vm11, %v4254_v22, %v1514_v12  ;;  %v1449_v16 = vmul.f32 0.01, %v5347_v35 }
 0x1c3   :  { %v2018_v39 = vpop.xlane.xlu1 %2017  ;;  %v2015_v14 = vpop.xlane.xlu0 %2014  ;;  %v1775_v7 = vmul.f32 %v4395_v10, %v1640_v58  ;;  %v1774_v17 = vmul.f32 %v4395_v10, %v1639_v32  ;;  %vm1321_vm10 = vcmp.ge.f32.partialorder %v5347_v35, 0.0  ;;  %v1710_v41 = vmul.f32 %v4395_v10, %v1575_v36 }
 0x1c4   :  { %v2252_v49 = vadd.f32 %v4456_v31, %v2018_v39  ;;  %v2508_v29 = vsel %vm5321_vm3, %v2506_v25, %v2501_v59  ;;  %v2251_v1 = vadd.f32 %v4456_v31, %v2015_v14  ;;  %v1938_v11 = vsel %vm1790_vm7, %v1711_v27, 0.0  ;;  %v5349_v14 = vld [vmem:[#allocation17_spill] sm:$0xff] }
 0x1c5   :  { %v2515_v22 = vsel %vm5320_vm0, %v2513_v40, %v2508_v29  ;;  %v2537_v53 = vadd.s32 4294967176, %v4431_v34  ;;  %v1578_v59 = vsel %vm1322_vm12, %v4256_v20, %v1450_v56  ;;  %v1641_v36 = vsel %vm1385_vm4, %v4261_v3, %v1513_v51 }
 0x1c6   :  { %2122 = vadd.xlane.f32.xlu1 %v2121_v42  ;;  %v2838_v62 = vrot.slane %v2252_v49, %v4679_v19  ;;  %v2833_v32 = vrot.slane %v2251_v1, %v4682_v54  ;;  %1930 = vadd.xlane.f32.xlu0 %v1929_v8  ;;  %v2130_v28 = vsel %vm1790_vm7, %v1775_v7, 0.0  ;;  %v1577_v50 = vsel %vm1321_vm10, %v5347_v35, %v1449_v16 }
 0x1c7   :  { %v1832_v9 = vpop.xlane.xlu1 %1831  ;;  %v1829_v42 = vpop.xlane.xlu0 %1828  ;;  %v2127_v5 = vsel %vm1790_vm7, %v1774_v17, 0.0  ;;  %vm5323_vm11 = vcmask 917312   ;;  %v1935_v12 = vsel %vm1790_vm7, %v1710_v41, 0.0  ;;  %v2530_v20 = vadd.s32 4294967184, %v4431_v34  ;;  %v5348_v34 = vld [vmem:[#allocation16_spill] sm:$0xff] }
 0x1c8   :  { %v2190_v23 = vadd.f32 %v4456_v31, %v1832_v9  ;;  %v2834_v18 = vsel %vm5321_vm3, %v2833_v32, %v2829_v63  ;;  %v2189_v8 = vadd.f32 %v4456_v31, %v1829_v42  ;;  %v4797_v58 = vsub.s32 %v2537_v53, %v4445_v61  ;;  %v5350_v32 = vld [vmem:[#allocation18_spill] sm:$0xff] }
 0x1c9   :  { %v2839_v52 = vsel %vm5320_vm0, %v2838_v62, %v2834_v18  ;;  %v1713_v40 = vmul.f32 %v4395_v10, %v1578_v59  ;;  %vm2535_vm4 = vcmask 982912   ;;  %v1452_v56 = vmul.f32 0.01, %v4273_v33 }
 0x1ca   :  { %1939 = vadd.xlane.f32.xlu1 %v1938_v11  ;;  %v2527_v15 = vrot.slane %v2190_v23, %v4738_v38  ;;  %v2520_v39 = vrot.slane %v2189_v8, %v4747_v6  ;;  %2131 = vadd.xlane.f32.xlu0 %v2130_v28  ;;  %vm2542_vm12 = vcmask 1048512   ;;  %vm1388_vm10 = vcmp.ge.f32.partialorder %v5348_v34, 0.0 }
 0x1cb   :  { %v2024_v3 = vpop.xlane.xlu1 %2023  ;;  %v2021_v27 = vpop.xlane.xlu0 %2020  ;;  %v1516_v25 = vmul.f32 0.01, %v5348_v34  ;;  %vm1324_vm0 = vcmp.ge.f32.partialorder %v4273_v33, 0.0  ;;  %vm1387_vm3 = vcmp.ge.f32.partialorder %v5349_v14, 0.0  ;;  %v1515_v7 = vmul.f32 0.01, %v5349_v14 }
 0x1cc   :  { %v2254_v63 = vadd.f32 %v4456_v31, %v2024_v3  ;;  %v2522_v49 = vsel %vm2521_vm5, %v2520_v39, %v2515_v22  ;;  %v2253_v51 = vadd.f32 %v4456_v31, %v2021_v27  ;;  %v1777_v29 = vmul.f32 %v4395_v10, %v1642_v37 }
 0x1cd   :  { %v2529_v17 = vsel %vm5323_vm11, %v2527_v15, %v2522_v49  ;;  %v1944_v1 = vsel %vm1790_vm7, %v1713_v40, 0.0  ;;  %v4817_v9 = vsub.s32 %v2530_v20, %v4445_v61  ;;  %v1580_v22 = vsel %vm1324_vm0, %v4273_v33, %v1452_v56 }
 0x1ce   :  { %2128 = vadd.xlane.f32.xlu1 %v2127_v5  ;;  %v2848_v35 = vrot.slane %v2254_v63, %v4738_v38  ;;  %v2843_v41 = vrot.slane %v2253_v51, %v4747_v6  ;;  %1936 = vadd.xlane.f32.xlu0 %v1935_v12  ;;  %v1644_v53 = vsel %vm1388_vm10, %v5348_v34, %v1516_v25  ;;  %vm1323_vm8 = vcmp.ge.f32.partialorder %v5350_v32, 0.0 }
 0x1cf   :  { %v1838_v16 = vpop.xlane.xlu1 %1837  ;;  %v1835_v11 = vpop.xlane.xlu0 %1834  ;;  %v1451_v37 = vmul.f32 0.01, %v5350_v32  ;;  %v1776_v23 = vmul.f32 %v4395_v10, %v1641_v36  ;;  %v1643_v61 = vsel %vm1387_vm3, %v5349_v14, %v1515_v7  ;;  %v1712_v33 = vmul.f32 %v4395_v10, %v1577_v50 }
 0x1d0   :  { %v2192_v62 = vadd.f32 %v4456_v31, %v1838_v16  ;;  %v2844_v59 = vsel %vm2521_vm5, %v2843_v41, %v2839_v52  ;;  %v2191_v42 = vadd.f32 %v4456_v31, %v1835_v11  ;;  %v2136_v5 = vsel %vm1790_vm7, %v1777_v29, 0.0 }
 0x1d1   :  { %v2849_v8 = vsel %vm5323_vm11, %v2848_v35, %v2844_v59  ;;  %v1715_v36 = vmul.f32 %v4395_v10, %v1580_v22  ;;  %vm1390_vm0 = vcmp.ge.f32.partialorder %v4290_v43, 0.0  ;;  %v1454_v15 = vmul.f32 0.01, %v4295_v46 }
 0x1d2   :  { %1945 = vadd.xlane.f32.xlu1 %v1944_v1  ;;  %v2541_v28 = vrot.slane %v2192_v62, %v4797_v58  ;;  %v2534_v12 = vrot.slane %v2191_v42, %v4817_v9  ;;  %2137 = vadd.xlane.f32.xlu0 %v2136_v5  ;;  %v2133_v50 = vsel %vm1790_vm7, %v1776_v23, 0.0  ;;  %v1518_v52 = vmul.f32 0.01, %v4290_v43  ;;  %v5352_v5 = vld [vmem:[#allocation19_spill] sm:$0xff] }
 0x1d3   :  { %v2030_v18 = vpop.xlane.xlu1 %2029  ;;  %v2027_v3 = vpop.xlane.xlu0 %2026  ;;  %vm1326_vm3 = vcmp.ge.f32.partialorder %v4295_v46, 0.0  ;;  %vm1389_vm10 = vcmp.ge.f32.partialorder %v4297_v45, 0.0  ;;  %v1941_v63 = vsel %vm1790_vm7, %v1712_v33, 0.0  ;;  %v1517_v56 = vmul.f32 0.01, %v4297_v45 }
 0x1d4   :  { %v2256_v20 = vadd.f32 %v4456_v31, %v2030_v18  ;;  %v2536_v40 = vsel %vm2535_vm4, %v2534_v12, %v2529_v17  ;;  %v2255_v39 = vadd.f32 %v4456_v31, %v2027_v3  ;;  %v1779_v49 = vmul.f32 %v4395_v10, %v1644_v53 }
 0x1d5   :  { %v4849_v27 = vsel %vm2542_vm12, %v2541_v28, %v2536_v40  ;;  %v1950_v51 = vsel %vm1790_vm7, %v1715_v36, 0.0  ;;  %v1579_v14 = vsel %vm1323_vm8, %v5350_v32, %v1451_v37  ;;  %v1582_v16 = vsel %vm1326_vm3, %v4295_v46, %v1454_v15 }
 0x1d6   :  { %2134 = vadd.xlane.f32.xlu1 %v2133_v50  ;;  %v2858_v34 = vrot.slane %v2256_v20, %v4797_v58  ;;  %v2853_v7 = vrot.slane %v2255_v39, %v4817_v9  ;;  %1942 = vadd.xlane.f32.xlu0 %v1941_v63  ;;  %v1646_v29 = vsel %vm1390_vm0, %v4290_v43, %v1518_v52  ;;  %vm1325_vm11 = vcmp.ge.f32.partialorder %v4302_v48, 0.0  ;;  %v5353_v20 = vld [vmem:[#allocation21_spill] sm:$0xff] }
 0x1d7   :  { %v1844_v25 = vpop.xlane.xlu1 %1843  ;;  %v1841_v17 = vpop.xlane.xlu0 %1840  ;;  %v1778_v1 = vmul.f32 %v4395_v10, %v1643_v61  ;;  %v1645_v11 = vsel %vm1389_vm10, %v4297_v45, %v1517_v56  ;;  %v2142_v43 = vsel %vm1790_vm7, %v1779_v49, 0.0  ;;  %v1714_v32 = vmul.f32 %v4395_v10, %v1579_v14  ;;  %v5351_v61 = vld [vmem:[#allocation20_spill] sm:$0xff] }
 0x1d8   :  { %v2194_v35 = vadd.f32 %v4456_v31, %v1844_v25  ;;  %v2854_v41 = vsel %vm2535_vm4, %v2853_v7, %v2849_v8  ;;  %v2193_v22 = vadd.f32 %v4456_v31, %v1841_v17  ;;  %v1717_v37 = vmul.f32 %v4395_v10, %v1582_v16 }
 0x1d9   :  { %v4874_v46 = vsel %vm2542_vm12, %v2858_v34, %v2854_v41  ;;  %v1453_v59 = vmul.f32 0.01, %v4302_v48  ;;  %v1456_v45 = vmul.f32 0.01, %v5351_v61  ;;  %v2139_v28 = vsel %vm1790_vm7, %v1778_v1, 0.0 }
 0x1da   :  { %v2551_v62 = vrot.slane %v2194_v35, %v4479_v21  ;;  %1951 = vadd.xlane.f32.xlu1 %v1950_v51  ;;  %v2547_v23 = vrot.slane %v2193_v22, %v4470_v30  ;;  %2143 = vadd.xlane.f32.xlu0 %v2142_v43  ;;  %vm1392_vm8 = vcmp.ge.f32.partialorder %v5352_v5, 0.0  ;;  %v1520_v18 = vmul.f32 0.01, %v5352_v5 }
 0x1db   :  { %v2036_v53 = vpop.xlane.xlu1 %2035  ;;  %v2033_v33 = vpop.xlane.xlu0 %2032  ;;  %vm1328_vm0 = vcmp.ge.f32.partialorder %v5351_v61, 0.0  ;;  %v1519_v15 = vmul.f32 0.01, %v5353_v20  ;;  %v1947_v3 = vsel %vm1790_vm7, %v1714_v32, 0.0  ;;  %vm1391_vm3 = vcmp.ge.f32.partialorder %v5353_v20, 0.0 }
 0x1dc   :  { %v2258_v42 = vadd.f32 %v4456_v31, %v2036_v53  ;;  %v2552_v8 = vsel %vm2444_vm13, %v2551_v62, %v2547_v23  ;;  %v2257_v12 = vadd.f32 %v4456_v31, %v2033_v33  ;;  %v1781_v52 = vmul.f32 %v4395_v10, %v1646_v29  ;;  %v5354_v62 = vld [vmem:[#allocation22_spill] sm:$0xff] }
 0x1dd   :  { %v1956_v40 = vsel %vm1790_vm7, %v1717_v37, 0.0  ;;  %v1581_v39 = vsel %vm1325_vm11, %v4302_v48, %v1453_v59  ;;  %v1584_v34 = vsel %vm1328_vm0, %v5351_v61, %v1456_v45  ;;  %v1780_v49 = vmul.f32 %v4395_v10, %v1645_v11 }
 0x1de   :  { %v2867_v36 = vrot.slane %v2258_v42, %v4479_v21  ;;  %2140 = vadd.xlane.f32.xlu1 %v2139_v28  ;;  %v2863_v63 = vrot.slane %v2257_v12, %v4470_v30  ;;  %1948 = vadd.xlane.f32.xlu0 %v1947_v3  ;;  %v1648_v7 = vsel %vm1392_vm8, %v5352_v5, %v1520_v18  ;;  %v2148_v16 = vsel %vm1790_vm7, %v1781_v52, 0.0 }
 0x1df   :  { %v1850_v50 = vpop.xlane.xlu1 %1849  ;;  %v1847_v25 = vpop.xlane.xlu0 %1846  ;;  %v1647_v48 = vsel %vm1391_vm3, %v5353_v20, %v1519_v15  ;;  %v1716_v29 = vmul.f32 %v4395_v10, %v1581_v39  ;;  %v1719_v1 = vmul.f32 %v4395_v10, %v1584_v34  ;;  %v1455_v22 = vmul.f32 0.01, %v5354_v62 }
 0x1e0   :  { %v2196_v56 = vadd.f32 %v4456_v31, %v1850_v50  ;;  %v2868_v51 = vsel %vm2444_vm13, %v2867_v36, %v2863_v63  ;;  %v2195_v14 = vadd.f32 %v4456_v31, %v1847_v25  ;;  %v1458_v43 = vmul.f32 0.01, %v4328_v26 }
 0x1e1   :  { %vm1327_vm11 = vcmp.ge.f32.partialorder %v5354_v62, 0.0  ;;  %v2145_v32 = vsel %vm1790_vm7, %v1780_v49, 0.0  ;;  %v1522_v37 = vmul.f32 0.01, %v4326_v4  ;;  %vm1330_vm10 = vcmp.ge.f32.partialorder %v4328_v26, 0.0  ;;  %v5356_v49 = vld [vmem:[#allocation25_spill] sm:$0xff] }
 0x1e2   :  { %1957 = vadd.xlane.f32.xlu1 %v1956_v40  ;;  %v2561_v35 = vrot.slane %v2196_v56, %v4484_v24  ;;  %v2556_v41 = vrot.slane %v2195_v14, %v4512_v44  ;;  %2149 = vadd.xlane.f32.xlu0 %v2148_v16  ;;  %vm1394_vm8 = vcmp.ge.f32.partialorder %v4326_v4, 0.0  ;;  %v1783_v42 = vmul.f32 %v4395_v10, %v1648_v7  ;;  %v5355_v40 = vld [vmem:[#allocation23_spill] sm:$0xff]  ;;  %v4944_v56 = vld [vmem:[%s5296_s2] ss:$0 sm:$0xff]  ;;  %s3678_s2 = smov [#allocation8]  }
 0x1e3   :  { %v2042_v17 = vpop.xlane.xlu1 %2041  ;;  %v2039_v53 = vpop.xlane.xlu0 %2038  ;;  %v1953_v45 = vsel %vm1790_vm7, %v1716_v29, 0.0  ;;  %v1962_v28 = vsel %vm1790_vm7, %v1719_v1, 0.0  ;;  %v1583_v18 = vsel %vm1327_vm11, %v5354_v62, %v1455_v22  ;;  %v1586_v36 = vsel %vm1330_vm10, %v4328_v26, %v1458_v43  ;;  %v5357_v22 = vld [vmem:[#allocation24_spill] sm:$0xff]  ;;  %s3119_s21 = sshll.u32 %s3678_s2, 4  ;;  %s3120_s21 = int_to_ptr.vmem [resolvable:$true] %s3119_s21 }
 0x1e4   :  { %v2260_v11 = vadd.f32 %v4456_v31, %v2042_v17  ;;  %v2557_v23 = vsel %vm2451_vm1, %v2556_v41, %v2552_v8  ;;  %v2259_v59 = vadd.f32 %v4456_v31, %v2039_v53  ;;  %v1650_v20 = vsel %vm1394_vm8, %v4326_v4, %v1522_v37  ;;  %s3645_s22 = scalar_lea.vmem %s3120_s21, 128  ;;  %p3650_p3 = scmp.lt.s32.totalorder %s3120_s21, %s3120_s21 }
 0x1e5   :  { %v2562_v5 = vsel %vm2458_vm2, %v2561_v35, %v2557_v23  ;;  %vm1393_vm0 = vcmp.ge.f32.partialorder %v4333_v60, 0.0  ;;  %v1521_v15 = vmul.f32 0.01, %v4333_v60  ;;  %v1782_v3 = vmul.f32 %v4395_v10, %v1647_v48  ;;  %p3646_p2 = scmp.ne.s32.totalorder %s3120_s21, %s3645_s22  ;;  %p3651_p4 = scmp.lt.s32.totalorder %s3645_s22, %s3645_s22 }
 0x1e6   :  { %2146 = vadd.xlane.f32.xlu1 %v2145_v32  ;;  %v2877_v61 = vrot.slane %v2260_v11, %v4484_v24  ;;  %v2872_v8 = vrot.slane %v2259_v59, %v4512_v44  ;;  %1954 = vadd.xlane.f32.xlu0 %v1953_v45  ;;  %v2154_v52 = vsel %vm1790_vm7, %v1783_v42, 0.0  ;;  %vm1329_vm3 = vcmp.ge.f32.partialorder %v5355_v40, 0.0  ;;  %v5358_v42 = vld [vmem:[#allocation26_spill] sm:$0xff] }
 0x1e7   :  { %v1856_v33 = vpop.xlane.xlu1 %1855  ;;  %v2048_v12 = vpop.xlane.xlu0 %2047  ;;  %v1457_v39 = vmul.f32 0.01, %v5355_v40  ;;  %v1718_v10 = vmul.f32 %v4944_v56, %v1583_v18  ;;  %v1721_v34 = vmul.f32 %v4944_v56, %v1586_v36  ;;  %v1649_v7 = vsel %vm1393_vm0, %v4333_v60, %v1521_v15  ;;  %p3652_p5 = por %p3651_p4, %p3650_p3 }
 0x1e8   :  { %v2873_v50 = vsel %vm2451_vm1, %v2872_v8, %v2868_v51  ;;  %v2262_v26 = vadd.f32 %v4456_v31, %v2048_v12  ;;  %v1460_v51 = vmul.f32 0.01, %v5356_v49  ;;  %v2198_v14 = vadd.f32 %v4456_v31, %v1856_v33 }
 0x1e9   :  { %v2878_v63 = vsel %vm2458_vm2, %v2877_v61, %v2873_v50  ;;  %v2151_v35 = vsel %vm1790_vm7, %v1782_v3, 0.0  ;;  %vm1332_vm11 = vcmp.ge.f32.partialorder %v5356_v49, 0.0  ;;  %v1585_v16 = vsel %vm1329_vm3, %v5355_v40, %v1457_v39  ;;  %p3653_p6 = pnand %p3652_p5, %p3646_p2 }
 0x1ea   :  { %1963 = vadd.xlane.f32.xlu1 %v1962_v28  ;;  %2155 = vadd.xlane.f32.xlu0 %v2154_v52  ;;  %v1785_v1 = vmul.f32 %v4944_v56, %v1650_v20  ;;  %v2887_v41 = vrot.slane %v2262_v26, %v4536_v0  ;;  %v1959_v60 = vsel %vm1790_vm7, %v1718_v10, 0.0  ;;  %vm1396_vm10 = vcmp.ge.f32.partialorder %v5357_v22, 0.0 }
 0x1eb   :  { %v2045_v4 = vpop.xlane.xlu1 %2044  ;;  %v1853_v48 = vpop.xlane.xlu0 %1852  ;;  %v1968_v11 = vsel %vm1790_vm7, %v1721_v34, 0.0  ;;  %v1524_v32 = vmul.f32 0.01, %v5357_v22  ;;  %v1588_v37 = vsel %vm1332_vm11, %v5356_v49, %v1460_v51  ;;  %v2571_v23 = vrot.slane %v2198_v14, %v4536_v0  ;;  %v5360_v34 = vld [vmem:[#allocation28_spill] sm:$0xff] }
 0x1ec   :  { %v2261_v25 = vadd.f32 %v4456_v31, %v2045_v4  ;;  %v2197_v29 = vadd.f32 %v4456_v31, %v1853_v48  ;;  %v1523_v61 = vmul.f32 0.01, %v5358_v42  ;;  %v1784_v33 = vmul.f32 %v4944_v56, %v1649_v7 }
 0x1ed   :  { %vm1395_vm8 = vcmp.ge.f32.partialorder %v5358_v42, 0.0  ;;  %v2160_v18 = vsel %vm1790_vm7, %v1785_v1, 0.0  ;;  %v1720_v20 = vmul.f32 %v4944_v56, %v1585_v16  ;;  %v1723_v15 = vmul.f32 %v4944_v56, %v1588_v37 }
 0x1ee   :  { %v2882_v17 = vrot.slane %v2261_v25, %v4539_v47  ;;  %2152 = vadd.xlane.f32.xlu1 %v2151_v35  ;;  %v2566_v53 = vrot.slane %v2197_v29, %v4539_v47  ;;  %1960 = vadd.xlane.f32.xlu0 %v1959_v60  ;;  %v1652_v3 = vsel %vm1396_vm10, %v5357_v22, %v1524_v32  ;;  %vm1334_vm3 = vcmp.ge.f32.partialorder %v5360_v34, 0.0  ;;  %v5361_v29 = vld [vmem:[#allocation30_spill] sm:$0xff] }
 0x1ef   :  { %v1862_v62 = vpop.xlane.xlu1 %1861  ;;  %v2054_v59 = vpop.xlane.xlu0 %2053  ;;  %v1651_v39 = vsel %vm1395_vm8, %v5358_v42, %v1523_v61  ;;  %v1462_v25 = vmul.f32 0.01, %v5360_v34  ;;  %v1965_v51 = vsel %vm1790_vm7, %v1720_v20, 0.0  ;;  %v1787_v7 = vmul.f32 %v4944_v56, %v1652_v3 }
 0x1f0   :  { %v2883_v43 = vsel %vm2465_vm6, %v2882_v17, %v2878_v63  ;;  %v2567_v28 = vsel %vm2465_vm6, %v2566_v53, %v2562_v5  ;;  %v2264_v8 = vadd.f32 %v4456_v31, %v2054_v59  ;;  %v5359_v5 = vld [vmem:[#allocation27_spill] sm:$0xff]  ;;  %v2200_v40 = vadd.f32 %v4456_v31, %v1862_v62  ;;  %v5362_v53 = vld [vmem:[#allocation29_spill] sm:$0xff] }
 0x1f1   :  { %v2888_v45 = vsel %vm2472_vm9, %v2887_v41, %v2883_v43  ;;  %v2572_v12 = vsel %vm2472_vm9, %v2571_v23, %v2567_v28  ;;  %v1459_v50 = vmul.f32 0.01, %v5359_v5  ;;  %vm1331_vm0 = vcmp.ge.f32.partialorder %v5359_v5, 0.0  ;;  %v5363_v28 = vld [vmem:[#allocation31_spill] sm:$0xff] }
 0x1f2   :  { %1969 = vadd.xlane.f32.xlu1 %v1968_v11  ;;  %2161 = vadd.xlane.f32.xlu0 %v2160_v18  ;;  %v2157_v63 = vsel %vm1790_vm7, %v1784_v33, 0.0  ;;  %v2897_v49 = vrot.slane %v2264_v8, %v4572_v13  ;;  %v1974_v48 = vsel %vm1790_vm7, %v1723_v15, 0.0  ;;  %v1461_v1 = vmul.f32 0.01, %v5361_v29 }
 0x1f3   :  { %v2051_v36 = vpop.xlane.xlu1 %2050  ;;  %v1859_v26 = vpop.xlane.xlu0 %1858  ;;  %v1587_v35 = vsel %vm1331_vm0, %v5359_v5, %v1459_v50  ;;  %v2581_v41 = vrot.slane %v2200_v40, %v4572_v13  ;;  %vm1333_vm11 = vcmp.ge.f32.partialorder %v5361_v29, 0.0  ;;  %v1786_v22 = vmul.f32 %v4944_v56, %v1651_v39 }
 0x1f4   :  { %v2263_v52 = vadd.f32 %v4456_v31, %v2051_v36  ;;  %v2199_v10 = vadd.f32 %v4456_v31, %v1859_v26  ;;  %v1590_v43 = vsel %vm1334_vm3, %v5360_v34, %v1462_v25  ;;  %vm1398_vm10 = vcmp.ge.f32.partialorder %v5362_v53, 0.0 }
 0x1f5   :  { %v1526_v32 = vmul.f32 0.01, %v5362_v53  ;;  %v2166_v23 = vsel %vm1790_vm7, %v1787_v7, 0.0  ;;  %v1722_v61 = vmul.f32 %v4944_v56, %v1587_v35  ;;  %v1525_v18 = vmul.f32 0.01, %v5363_v28 }
 0x1f6   :  { %v2892_v4 = vrot.slane %v2263_v52, %v4579_v2  ;;  %2158 = vadd.xlane.f32.xlu1 %v2157_v63  ;;  %v2576_v17 = vrot.slane %v2199_v10, %v4579_v2  ;;  %1966 = vadd.xlane.f32.xlu0 %v1965_v51  ;;  %vm1397_vm8 = vcmp.ge.f32.partialorder %v5363_v28, 0.0  ;;  %v1725_v20 = vmul.f32 %v4944_v56, %v1590_v43 }
 0x1f7   :  { %v1868_v14 = vpop.xlane.xlu1 %1867  ;;  %v2060_v60 = vpop.xlane.xlu0 %2059  ;;  %v1654_v15 = vsel %vm1398_vm10, %v5362_v53, %v1526_v32  ;;  %v1971_v40 = vsel %vm1790_vm7, %v1722_v61, 0.0  ;;  %vm5364_vm0 = vcmask 589312   ;;  %vm5365_vm3 = vcmask 654912  }
 0x1f8   :  { %v2893_v16 = vsel %vm2479_vm14, %v2892_v4, %v2888_v45  ;;  %v2577_v11 = vsel %vm2479_vm14, %v2576_v17, %v2572_v12  ;;  %v2266_v37 = vadd.f32 %v4456_v31, %v2060_v60  ;;  %v1589_v45 = vsel %vm1333_vm11, %v5361_v29, %v1461_v1  ;;  %vm5366_vm11 = vmmov %vm5364_vm0 }
 0x1f9   :  { %v2898_v62 = vsel %vm2486_vm15, %v2897_v49, %v2893_v16  ;;  %v2582_v42 = vsel %vm2486_vm15, %v2581_v41, %v2577_v11  ;;  %v2202_v8 = vadd.f32 %v4456_v31, %v1868_v14  ;;  %v2163_v12 = vsel %vm1790_vm7, %v1786_v22, 0.0  ;;  %vm5367_vm10 = vmmov %vm5365_vm3 }
 0x1fa   :  { %1975 = vadd.xlane.f32.xlu1 %v1974_v48  ;;  %2167 = vadd.xlane.f32.xlu0 %v2166_v23  ;;  %v2907_v50 = vrot.slane %v2266_v37, %v4650_v55  ;;  %v1724_v52 = vmul.f32 %v4944_v56, %v1589_v45  ;;  %v1653_v4 = vsel %vm1397_vm8, %v5363_v28, %v1525_v18  ;;  %v1980_v25 = vsel %vm1790_vm7, %v1725_v20, 0.0 }
 0x1fb   :  { %v2057_v59 = vpop.xlane.xlu1 %2056  ;;  %v1865_v36 = vpop.xlane.xlu0 %1864  ;;  %v2591_v10 = vrot.slane %v2202_v8, %v4650_v55  ;;  %v1789_v51 = vmul.f32 %v4944_v56, %v1654_v15  ;;  %v1788_v7 = vmul.f32 %v4944_v56, %v1653_v4  ;;  %vm5368_vm8 = vcmask 720512  }
 0x1fc   :  { %v2265_v33 = vadd.f32 %v4456_v31, %v2057_v59  ;;  %v2201_v5 = vadd.f32 %v4456_v31, %v1865_v36  ;;  %v1977_v35 = vsel %vm1790_vm7, %v1724_v52, 0.0 }
 0x1fd   :  { %v2172_v60 = vsel %vm1790_vm7, %v1789_v51, 0.0  ;;  %v2169_v11 = vsel %vm1790_vm7, %v1788_v7, 0.0  ;;  %vm5372_vm7 = vcmask 917312  }
 0x1fe   :  { %v2902_v3 = vrot.slane %v2265_v33, %v4665_v57  ;;  %2164 = vadd.xlane.f32.xlu1 %v2163_v12  ;;  %v2586_v63 = vrot.slane %v2201_v5, %v4665_v57  ;;  %1972 = vadd.xlane.f32.xlu0 %v1971_v40 }
 0x1ff   :  { %v1874_v39 = vpop.xlane.xlu1 %1873  ;;  %v2066_v34 = vpop.xlane.xlu0 %2065 }
 0x200   :  { %v2903_v26 = vsel %vm5364_vm0, %v2902_v3, %v2898_v62  ;;  %v2587_v14 = vsel %vm5366_vm11, %v2586_v63, %v2582_v42  ;;  %v2268_v48 = vadd.f32 %v4456_v31, %v2066_v34  ;;  %v2204_v1 = vadd.f32 %v4456_v31, %v1874_v39 }
 0x201   :  { %v2908_v49 = vsel %vm5365_vm3, %v2907_v50, %v2903_v26  ;;  %v2592_v17 = vsel %vm5367_vm10, %v2591_v10, %v2587_v14  ;;  %vm5369_vm0 = vcmask 786112   ;;  %vm5370_vm3 = vmmov %vm5368_vm8 }
 0x202   :  { %1981 = vadd.xlane.f32.xlu1 %v1980_v25  ;;  %1978 = vadd.xlane.f32.xlu0 %v1977_v35  ;;  %v2917_v56 = vrot.slane %v2268_v48, %v4679_v19  ;;  %v2601_v37 = vrot.slane %v2204_v1, %v4679_v19  ;;  %vm5371_vm11 = vmmov %vm5369_vm0 }
 0x203   :  { %v2063_v16 = vpop.xlane.xlu1 %2062  ;;  %v1871_v41 = vpop.xlane.xlu0 %1870  ;;  %vm5373_vm10 = vmmov %vm5372_vm7 }
 0x204   :  { %v2267_v29 = vadd.f32 %v4456_v31, %v2063_v16  ;;  %v2203_v22 = vadd.f32 %v4456_v31, %v1871_v41 }
 0x206   :  { %v2912_v62 = vrot.slane %v2267_v29, %v4682_v54  ;;  %2173 = vadd.xlane.f32.xlu1 %v2172_v60  ;;  %v2596_v32 = vrot.slane %v2203_v22, %v4682_v54  ;;  %2170 = vadd.xlane.f32.xlu0 %v2169_v11 }
 0x207   :  { %v1880_v43 = vpop.xlane.xlu1 %1879  ;;  %v2072_v23 = vpop.xlane.xlu0 %2071 }
 0x208   :  { %v2913_v53 = vsel %vm5368_vm8, %v2912_v62, %v2908_v49  ;;  %v2597_v42 = vsel %vm5370_vm3, %v2596_v32, %v2592_v17  ;;  %v2270_v61 = vadd.f32 %v4456_v31, %v2072_v23  ;;  %v2206_v18 = vadd.f32 %v4456_v31, %v1880_v43 }
 0x209   :  { %v2918_v59 = vsel %vm5369_vm0, %v2917_v56, %v2913_v53  ;;  %v2602_v33 = vsel %vm5371_vm11, %v2601_v37, %v2597_v42  ;;  %vm3097_vm8 = vcmask 1041409   ;;  %vm5374_vm0 = vcmask 589312  }
 0x20a   :  { %v2927_v20 = vrot.slane %v2270_v61, %v4738_v38  ;;  %v2611_v50 = vrot.slane %v2206_v18, %v4738_v38  ;;  %vm5375_vm3 = vcmask 654912   ;;  %vm5376_vm11 = vcmask 720512  }
 0x20b   :  { %v2069_v45 = vpop.xlane.xlu1 %2068  ;;  %v1877_v8 = vpop.xlane.xlu0 %1876 }
 0x20c   :  { %v2269_v28 = vadd.f32 %v4456_v31, %v2069_v45  ;;  %v2205_v12 = vadd.f32 %v4456_v31, %v1877_v8 }
 0x20e   :  { %v2922_v36 = vrot.slane %v2269_v28, %v4747_v6  ;;  %v2606_v5 = vrot.slane %v2205_v12, %v4747_v6 }
 0x20f   :  { %v1886_v15 = vpop.xlane.xlu1 %1885  ;;  %v2078_v52 = vpop.xlane.xlu0 %2077 }
 0x210   :  { %v2923_v3 = vsel %vm2521_vm5, %v2922_v36, %v2918_v59  ;;  %v2607_v39 = vsel %vm2521_vm5, %v2606_v5, %v2602_v33  ;;  %v2272_v26 = vadd.f32 %v4456_v31, %v2078_v52  ;;  %v2208_v34 = vadd.f32 %v4456_v31, %v1886_v15 }
 0x211   :  { %v2928_v40 = vsel %vm5372_vm7, %v2927_v20, %v2923_v3  ;;  %v2612_v4 = vsel %vm5373_vm10, %v2611_v50, %v2607_v39  ;;  %vm5377_vm7 = vmmov %vm5374_vm0 }
 0x212   :  { %v2937_v14 = vrot.slane %v2272_v26, %v4797_v58  ;;  %v2621_v16 = vrot.slane %v2208_v34, %v4797_v58  ;;  %vm5378_vm10 = vmmov %vm5375_vm3 }
 0x213   :  { %v2075_v63 = vpop.xlane.xlu1 %2074  ;;  %v1883_v25 = vpop.xlane.xlu0 %1882 }
 0x214   :  { %v2271_v10 = vadd.f32 %v4456_v31, %v2075_v63  ;;  %v2207_v51 = vadd.f32 %v4456_v31, %v1883_v25 }
 0x216   :  { %v2932_v49 = vrot.slane %v2271_v10, %v4817_v9  ;;  %v2616_v35 = vrot.slane %v2207_v51, %v4817_v9 }
 0x217   :  { %v1892_v7 = vpop.xlane.xlu1 %1891  ;;  %v2084_v29 = vpop.xlane.xlu0 %2083 }
 0x218   :  { %v2933_v48 = vsel %vm2535_vm4, %v2932_v49, %v2928_v40  ;;  %v2617_v1 = vsel %vm2535_vm4, %v2616_v35, %v2612_v4  ;;  %v2274_v41 = vadd.f32 %v4456_v31, %v2084_v29  ;;  %v2210_v56 = vadd.f32 %v4456_v31, %v1892_v7 }
 0x219   :  { %v5078_v17 = vsel %vm2542_vm12, %v2937_v14, %v2933_v48  ;;  %v2622_v60 = vsel %vm2542_vm12, %v2621_v16, %v2617_v1 }
 0x21a   :  { %v5084_v22 = vsel %vm3097_vm8, %v2622_v60, %v4849_v27  ;;  %v2946_v53 = vrot.slane %v2274_v41, %v4479_v21  ;;  %v2630_v59 = vrot.slane %v2210_v56, %v4479_v21  ;;  %vm5379_vm8 = vcmask 786112  }
 0x21b   :  { %v2081_v62 = vpop.xlane.xlu1 %2080  ;;  %v1889_v43 = vpop.xlane.xlu0 %1888 }
 0x21c   :  { %v2273_v11 = vadd.f32 %v4456_v31, %v2081_v62  ;;  %v2209_v37 = vadd.f32 %v4456_v31, %v1889_v43 }
 0x21e   :  { %v2942_v32 = vrot.slane %v2273_v11, %v4470_v30  ;;  %v2626_v61 = vrot.slane %v2209_v37, %v4470_v30 }
 0x21f   :  { %v1898_v23 = vpop.xlane.xlu1 %1897  ;;  %v2090_v27 = vpop.xlane.xlu0 %2089 }
 0x220   :  { %v2947_v42 = vsel %vm2444_vm13, %v2946_v53, %v2942_v32  ;;  %v2631_v45 = vsel %vm2444_vm13, %v2630_v59, %v2626_v61  ;;  %v2212_v28 = vadd.f32 %v4456_v31, %v1898_v23  ;;  %v2276_v20 = vadd.f32 %v4456_v31, %v2090_v27 }
 0x222   :  { %v2640_v15 = vrot.slane %v2212_v28, %v4484_v24  ;;  %v2956_v63 = vrot.slane %v2276_v20, %v4484_v24 }
 0x223   :  { %v1904_v33 = vpop.xlane.xlu1 %1903  ;;  %v1895_v18 = vpop.xlane.xlu0 %1894 }
 0x224   :  { %v2211_v8 = vadd.f32 %v4456_v31, %v1895_v18  ;;  %v2214_v35 = vadd.f32 %v4456_v31, %v1904_v33 }
 0x226   :  { %v2635_v12 = vrot.slane %v2211_v8, %v4512_v44  ;;  %v2650_v11 = vrot.slane %v2214_v35, %v4536_v0 }
 0x227   :  { %v2093_v36 = vpop.xlane.xlu1 %2092  ;;  %v2087_v3 = vpop.xlane.xlu0 %2086 }
 0x228   :  { %v2636_v5 = vsel %vm2451_vm1, %v2635_v12, %v2631_v45  ;;  %v2275_v50 = vadd.f32 %v4456_v31, %v2087_v3  ;;  %v2277_v52 = vadd.f32 %v4456_v31, %v2093_v36 }
 0x229   :  { %v2641_v39 = vsel %vm2458_vm2, %v2640_v15, %v2636_v5 }
 0x22a   :  { %v2951_v26 = vrot.slane %v2275_v50, %v4512_v44  ;;  %v2961_v34 = vrot.slane %v2277_v52, %v4539_v47 }
 0x22b   :  { %v1910_v40 = vpop.xlane.xlu1 %1909  ;;  %v2096_v4 = vpop.xlane.xlu0 %2095 }
 0x22c   :  { %v2952_v10 = vsel %vm2451_vm1, %v2951_v26, %v2947_v42  ;;  %v2278_v25 = vadd.f32 %v4456_v31, %v2096_v4  ;;  %v2216_v61 = vadd.f32 %v4456_v31, %v1910_v40 }
 0x22d   :  { %v2957_v49 = vsel %vm2458_vm2, %v2956_v63, %v2952_v10 }
 0x22e   :  { %v2962_v14 = vsel %vm2465_vm6, %v2961_v34, %v2957_v49  ;;  %v2966_v7 = vrot.slane %v2278_v25, %v4536_v0  ;;  %v2660_v12 = vrot.slane %v2216_v61, %v4572_v13 }
 0x22f   :  { %v2099_v51 = vpop.xlane.xlu1 %2098  ;;  %v1901_v16 = vpop.xlane.xlu0 %1900 }
 0x230   :  { %v2279_v48 = vadd.f32 %v4456_v31, %v2099_v51  ;;  %v2967_v29 = vsel %vm2472_vm9, %v2966_v7, %v2962_v14  ;;  %v2213_v1 = vadd.f32 %v4456_v31, %v1901_v16 }
 0x232   :  { %v2971_v41 = vrot.slane %v2279_v48, %v4579_v2  ;;  %v2645_v62 = vrot.slane %v2213_v1, %v4539_v47 }
 0x233   :  { %v1916_v60 = vpop.xlane.xlu1 %1915  ;;  %v2102_v43 = vpop.xlane.xlu0 %2101 }
 0x234   :  { %v2972_v56 = vsel %vm2479_vm14, %v2971_v41, %v2967_v29  ;;  %v2646_v53 = vsel %vm2465_vm6, %v2645_v62, %v2641_v39  ;;  %v2280_v32 = vadd.f32 %v4456_v31, %v2102_v43  ;;  %v2218_v39 = vadd.f32 %v4456_v31, %v1916_v60 }
 0x235   :  { %v2651_v37 = vsel %vm2472_vm9, %v2650_v11, %v2646_v53 }
 0x236   :  { %v2976_v59 = vrot.slane %v2280_v32, %v4572_v13  ;;  %v2670_v51 = vrot.slane %v2218_v39, %v4650_v55 }
 0x237   :  { %v2105_v23 = vpop.xlane.xlu1 %2104  ;;  %v1907_v27 = vpop.xlane.xlu0 %1906 }
 0x238   :  { %v2281_v42 = vadd.f32 %v4456_v31, %v2105_v23  ;;  %v2977_v45 = vsel %vm2486_vm15, %v2976_v59, %v2972_v56  ;;  %v2215_v33 = vadd.f32 %v4456_v31, %v1907_v27 }
 0x23a   :  { %v2981_v28 = vrot.slane %v2281_v42, %v4665_v57  ;;  %v2655_v8 = vrot.slane %v2215_v33, %v4579_v2 }
 0x23b   :  { %v1922_v18 = vpop.xlane.xlu1 %1921  ;;  %v2108_v20 = vpop.xlane.xlu0 %2107 }
 0x23c   :  { %v2982_v36 = vsel %vm5374_vm0, %v2981_v28, %v2977_v45  ;;  %v2656_v15 = vsel %vm2479_vm14, %v2655_v8, %v2651_v37  ;;  %v2282_v3 = vadd.f32 %v4456_v31, %v2108_v20  ;;  %v2220_v41 = vadd.f32 %v4456_v31, %v1922_v18  ;;  %vm5380_vm0 = vmmov %vm5376_vm11 }
 0x23d   :  { %v2661_v5 = vsel %vm2486_vm15, %v2660_v12, %v2656_v15 }
 0x23e   :  { %v2986_v52 = vrot.slane %v2282_v3, %v4650_v55  ;;  %v2680_v37 = vrot.slane %v2220_v41, %v4679_v19 }
 0x23f   :  { %v2111_v50 = vpop.xlane.xlu1 %2110  ;;  %v1913_v26 = vpop.xlane.xlu0 %1912 }
 0x240   :  { %v2283_v40 = vadd.f32 %v4456_v31, %v2111_v50  ;;  %v2987_v63 = vsel %vm5375_vm3, %v2986_v52, %v2982_v36  ;;  %v2217_v4 = vadd.f32 %v4456_v31, %v1913_v26  ;;  %vm5381_vm3 = vmmov %vm5379_vm8 }
 0x242   :  { %v2991_v10 = vrot.slane %v2283_v40, %v4682_v54  ;;  %v2665_v25 = vrot.slane %v2217_v4, %v4665_v57 }
 0x243   :  { %v1928_v34 = vpop.xlane.xlu1 %1927  ;;  %v2114_v14 = vpop.xlane.xlu0 %2113 }
 0x244   :  { %v2992_v49 = vsel %vm5376_vm11, %v2991_v10, %v2987_v63  ;;  %v2666_v7 = vsel %vm5377_vm7, %v2665_v25, %v2661_v5  ;;  %v2284_v48 = vadd.f32 %v4456_v31, %v2114_v14  ;;  %v2222_v33 = vadd.f32 %v4456_v31, %v1928_v34 }
 0x245   :  { %v2671_v35 = vsel %vm5378_vm10, %v2670_v51, %v2666_v7  ;;  %vm5382_vm11 = vcmask 917312   ;;  %vm3099_vm10 = vcmask 1042434  }
 0x246   :  { %v2996_v29 = vrot.slane %v2284_v48, %v4679_v19  ;;  %v2690_v3 = vrot.slane %v2222_v33, %v4738_v38  ;;  %vm5383_vm7 = vmmov %vm5382_vm11 }
 0x247   :  { %v2117_v16 = vpop.xlane.xlu1 %2116  ;;  %v1919_v60 = vpop.xlane.xlu0 %1918 }
 0x248   :  { %v2285_v1 = vadd.f32 %v4456_v31, %v2117_v16  ;;  %v2997_v62 = vsel %vm5379_vm8, %v2996_v29, %v2992_v49  ;;  %v2219_v56 = vadd.f32 %v4456_v31, %v1919_v60  ;;  %vm5391_vm8 = vmmov %vm5381_vm3 }
 0x24a   :  { %v3001_v11 = vrot.slane %v2285_v1, %v4747_v6  ;;  %v2675_v53 = vrot.slane %v2219_v56, %v4682_v54 }
 0x24b   :  { %v1934_v43 = vpop.xlane.xlu1 %1933  ;;  %v2120_v23 = vpop.xlane.xlu0 %2119 }
 0x24c   :  { %v3002_v32 = vsel %vm2521_vm5, %v3001_v11, %v2997_v62  ;;  %v2676_v59 = vsel %vm5380_vm0, %v2675_v53, %v2671_v35  ;;  %v2286_v42 = vadd.f32 %v4456_v31, %v2120_v23  ;;  %v2224_v5 = vadd.f32 %v4456_v31, %v1934_v43 }
 0x24d   :  { %v2681_v61 = vsel %vm5381_vm3, %v2680_v37, %v2676_v59 }
 0x24e   :  { %v3006_v45 = vrot.slane %v2286_v42, %v4738_v38  ;;  %v2700_v25 = vrot.slane %v2224_v5, %v4797_v58 }
 0x24f   :  { %v2126_v27 = vpop.xlane.xlu1 %2125  ;;  %v1925_v28 = vpop.xlane.xlu0 %1924 }
 0x250   :  { %v3007_v18 = vsel %vm5382_vm11, %v3006_v45, %v3002_v32  ;;  %v2221_v8 = vadd.f32 %v4456_v31, %v1925_v28  ;;  %v2288_v36 = vadd.f32 %v4456_v31, %v2126_v27  ;;  %vm3103_vm11 = vcmask 1044484  }
 0x252   :  { %v2685_v20 = vrot.slane %v2221_v8, %v4747_v6  ;;  %v3016_v26 = vrot.slane %v2288_v36, %v4797_v58 }
 0x253   :  { %v2123_v12 = vpop.xlane.xlu1 %2122  ;;  %v1931_v50 = vpop.xlane.xlu0 %1930 }
 0x254   :  { %v2287_v15 = vadd.f32 %v4456_v31, %v2123_v12  ;;  %v2686_v52 = vsel %vm2521_vm5, %v2685_v20, %v2681_v61  ;;  %v2223_v39 = vadd.f32 %v4456_v31, %v1931_v50 }
 0x255   :  { %v2691_v63 = vsel %vm5383_vm7, %v2690_v3, %v2686_v52 }
 0x256   :  { %v3011_v40 = vrot.slane %v2287_v15, %v4817_v9  ;;  %v2695_v34 = vrot.slane %v2223_v39, %v4817_v9 }
 0x257   :  { %v1940_v4 = vpop.xlane.xlu1 %1939  ;;  %v2132_v49 = vpop.xlane.xlu0 %2131 }
 0x258   :  { %v3012_v10 = vsel %vm2535_vm4, %v3011_v40, %v3007_v18  ;;  %v2696_v14 = vsel %vm2535_vm4, %v2695_v34, %v2691_v63  ;;  %v2290_v45 = vadd.f32 %v4456_v31, %v2132_v49 }
 0x259   :  { %v5177_v51 = vsel %vm2542_vm12, %v3016_v26, %v3012_v10  ;;  %v2701_v7 = vsel %vm2542_vm12, %v2700_v25, %v2696_v14 }
 0x25a   :  { %v5182_v35 = vsel %vm3099_vm10, %v2701_v7, %v5084_v22  ;;  %v2226_v22 = vadd.f32 %v4456_v31, %v1940_v4  ;;  %v3025_v5 = vrot.slane %v2290_v45, %v4479_v21  ;;  %vm3107_vm10 = vcmask 1046534  }
 0x25b   :  { %v2129_v48 = vpop.xlane.xlu1 %2128  ;;  %v1937_v16 = vpop.xlane.xlu0 %1936 }
 0x25c   :  { %v2225_v23 = vadd.f32 %v4456_v31, %v1937_v16  ;;  %v2289_v27 = vadd.f32 %v4456_v31, %v2129_v48  ;;  %v2709_v12 = vrot.slane %v2226_v22, %v4479_v21 }
 0x25e   :  { %v2705_v33 = vrot.slane %v2225_v23, %v4470_v30  ;;  %v3021_v3 = vrot.slane %v2289_v27, %v4470_v30 }
 0x25f   :  { %v1946_v29 = vpop.xlane.xlu1 %1945  ;;  %v2138_v1 = vpop.xlane.xlu0 %2137 }
 0x260   :  { %v2228_v20 = vadd.f32 %v4456_v31, %v1946_v29  ;;  %v2710_v50 = vsel %vm2444_vm13, %v2709_v12, %v2705_v33  ;;  %v2292_v26 = vadd.f32 %v4456_v31, %v2138_v1  ;;  %v3026_v25 = vsel %vm2444_vm13, %v3025_v5, %v3021_v3 }
 0x261   :  { %vm5384_vm13 = vcmask 589312  }
 0x262   :  { %v2719_v34 = vrot.slane %v2228_v20, %v4484_v24  ;;  %v3035_v29 = vrot.slane %v2292_v26, %v4484_v24 }
 0x263   :  { %v2135_v41 = vpop.xlane.xlu1 %2134  ;;  %v1943_v60 = vpop.xlane.xlu0 %1942 }
 0x264   :  { %v2227_v42 = vadd.f32 %v4456_v31, %v1943_v60  ;;  %v2291_v28 = vadd.f32 %v4456_v31, %v2135_v41 }
 0x266   :  { %v2714_v8 = vrot.slane %v2227_v42, %v4512_v44  ;;  %v3030_v52 = vrot.slane %v2291_v28, %v4512_v44 }
 0x267   :  { %v1952_v62 = vpop.xlane.xlu1 %1951  ;;  %v2144_v56 = vpop.xlane.xlu0 %2143 }
 0x268   :  { %v2715_v63 = vsel %vm2451_vm1, %v2714_v8, %v2710_v50  ;;  %v2230_v30 = vadd.f32 %v4456_v31, %v1952_v62  ;;  %v2294_v44 = vadd.f32 %v4456_v31, %v2144_v56  ;;  %v3031_v49 = vsel %vm2451_vm1, %v3030_v52, %v3026_v25  ;;  %vm5385_vm1 = vmmov %vm5384_vm13 }
 0x269   :  { %v2720_v7 = vsel %vm2458_vm2, %v2719_v34, %v2715_v63 }
 0x26a   :  { %v2729_v62 = vrot.slane %v2230_v30, %v4536_v0 }
 0x26b   :  { %v2141_v11 = vpop.xlane.xlu1 %2140  ;;  %v1949_v43 = vpop.xlane.xlu0 %1948 }
 0x26c   :  { %v2229_v36 = vadd.f32 %v4456_v31, %v1949_v43  ;;  %v2293_v40 = vadd.f32 %v4456_v31, %v2141_v11  ;;  %v3036_v43 = vsel %vm2458_vm2, %v3035_v29, %v3031_v49  ;;  %vm5386_vm2 = vcmask 654912  }
 0x26e   :  { %v2724_v4 = vrot.slane %v2229_v36, %v4539_v47  ;;  %v3040_v14 = vrot.slane %v2293_v40, %v4539_v47  ;;  %v3045_v47 = vrot.slane %v2294_v44, %v4536_v0 }
 0x26f   :  { %v1958_v53 = vpop.xlane.xlu1 %1957  ;;  %v2150_v32 = vpop.xlane.xlu0 %2149 }
 0x270   :  { %v2725_v1 = vsel %vm2465_vm6, %v2724_v4, %v2720_v7  ;;  %v2232_v56 = vadd.f32 %v4456_v31, %v1958_v53  ;;  %v2296_v22 = vadd.f32 %v4456_v31, %v2150_v32 }
 0x271   :  { %v2730_v24 = vsel %vm2472_vm9, %v2729_v62, %v2725_v1 }
 0x272   :  { %v2739_v0 = vrot.slane %v2232_v56, %v4572_v13  ;;  %v3055_v20 = vrot.slane %v2296_v22, %v4572_v13 }
 0x273   :  { %v2147_v37 = vpop.xlane.xlu1 %2146  ;;  %v1955_v59 = vpop.xlane.xlu0 %1954 }
 0x274   :  { %v2231_v10 = vadd.f32 %v4456_v31, %v1955_v59  ;;  %v2295_v48 = vadd.f32 %v4456_v31, %v2147_v37  ;;  %v3041_v37 = vsel %vm2465_vm6, %v3040_v14, %v3036_v43  ;;  %vm5387_vm6 = vmmov %vm5380_vm0 }
 0x276   :  { %v2734_v41 = vrot.slane %v2231_v10, %v4579_v2  ;;  %v3050_v23 = vrot.slane %v2295_v48, %v4579_v2  ;;  %v3046_v2 = vsel %vm2472_vm9, %v3045_v47, %v3041_v37  ;;  %vm5388_vm9 = vmmov %vm5386_vm2 }
 0x277   :  { %v1964_v61 = vpop.xlane.xlu1 %1963  ;;  %v2156_v18 = vpop.xlane.xlu0 %2155 }
 0x278   :  { %v2735_v27 = vsel %vm2479_vm14, %v2734_v41, %v2730_v24  ;;  %v2234_v33 = vadd.f32 %v4456_v31, %v1964_v61  ;;  %v3051_v8 = vsel %vm2479_vm14, %v3050_v23, %v3046_v2  ;;  %v2298_v61 = vadd.f32 %v4456_v31, %v2156_v18  ;;  %vm5389_vm14 = vmmov %vm5381_vm3 }
 0x279   :  { %v2740_v12 = vsel %vm2486_vm15, %v2739_v0, %v2735_v27  ;;  %vm3101_vm3 = vcmask 1043459  }
 0x27a   :  { %v2749_v50 = vrot.slane %v2234_v33, %v4650_v55  ;;  %v3065_v34 = vrot.slane %v2298_v61, %v4650_v55 }
 0x27b   :  { %v2153_v15 = vpop.xlane.xlu1 %2152  ;;  %v1961_v39 = vpop.xlane.xlu0 %1960 }
 0x27c   :  { %v2233_v60 = vadd.f32 %v4456_v31, %v1961_v39  ;;  %v2297_v59 = vadd.f32 %v4456_v31, %v2153_v15 }
 0x27e   :  { %v2744_v53 = vrot.slane %v2233_v60, %v4665_v57  ;;  %v3060_v36 = vrot.slane %v2297_v59, %v4665_v57  ;;  %v3056_v57 = vsel %vm2486_vm15, %v3055_v20, %v3051_v8  ;;  %vm5390_vm15 = vmmov %vm5380_vm0 }
 0x27f   :  { %v1970_v21 = vpop.xlane.xlu1 %1969  ;;  %v2162_v16 = vpop.xlane.xlu0 %2161  ;;  %vm5392_vm0 = vmmov %vm5383_vm7  ;;  %vm3105_vm7 = vcmask 1045509  }
 0x280   :  { %v2745_v15 = vsel %vm5384_vm13, %v2744_v53, %v2740_v12  ;;  %v2236_v52 = vadd.f32 %v4456_v31, %v1970_v21  ;;  %v3061_v39 = vsel %vm5385_vm1, %v3060_v36, %v3056_v57  ;;  %v2300_v30 = vadd.f32 %v4456_v31, %v2162_v16 }
 0x281   :  { %v2750_v26 = vsel %vm5386_vm2, %v2749_v50, %v2745_v15  ;;  %vm3109_vm13 = vcmask 1047559  }
 0x282   :  { %v2759_v21 = vrot.slane %v2236_v52, %v4679_v19  ;;  %v3075_v41 = vrot.slane %v2300_v30, %v4679_v19 }
 0x283   :  { %v2159_v11 = vpop.xlane.xlu1 %2158  ;;  %v1967_v42 = vpop.xlane.xlu0 %1966 }
 0x284   :  { %v2235_v45 = vadd.f32 %v4456_v31, %v1967_v42  ;;  %v2299_v3 = vadd.f32 %v4456_v31, %v2159_v11 }
 0x286   :  { %v2754_v5 = vrot.slane %v2235_v45, %v4682_v54  ;;  %v3070_v63 = vrot.slane %v2299_v3, %v4682_v54  ;;  %v3066_v54 = vsel %vm5388_vm9, %v3065_v34, %v3061_v39 }
 0x287   :  { %v1976_v28 = vpop.xlane.xlu1 %1975  ;;  %v2168_v32 = vpop.xlane.xlu0 %2167 }
 0x288   :  { %v2755_v4 = vsel %vm5387_vm6, %v2754_v5, %v2750_v26  ;;  %v2238_v25 = vadd.f32 %v4456_v31, %v1976_v28  ;;  %v3071_v29 = vsel %vm5390_vm15, %v3070_v63, %v3066_v54  ;;  %v2302_v60 = vadd.f32 %v4456_v31, %v2168_v32 }
 0x289   :  { %v2760_v7 = vsel %vm5389_vm14, %v2759_v21, %v2755_v4  ;;  %v3076_v37 = vsel %vm5391_vm8, %v3075_v41, %v3071_v29 }
 0x28a   :  { %v2769_v62 = vrot.slane %v2238_v25, %v4738_v38  ;;  %v3085_v42 = vrot.slane %v2302_v60, %v4738_v38 }
 0x28b   :  { %v2165_v40 = vpop.xlane.xlu1 %2164  ;;  %v1973_v13 = vpop.xlane.xlu0 %1972 }
 0x28c   :  { %v2301_v10 = vadd.f32 %v4456_v31, %v2165_v40  ;;  %v2237_v18 = vadd.f32 %v4456_v31, %v1973_v13 }
 0x28e   :  { %v2764_v49 = vrot.slane %v2237_v18, %v4747_v6  ;;  %v3080_v55 = vrot.slane %v2301_v10, %v4747_v6 }
 0x28f   :  { %v1982_v44 = vpop.xlane.xlu1 %1981  ;;  %v1979_v48 = vpop.xlane.xlu0 %1978 }
 0x290   :  { %v2240_v14 = vadd.f32 %v4456_v31, %v1982_v44  ;;  %v2765_v16 = vsel %vm2521_vm5, %v2764_v49, %v2760_v7  ;;  %v2239_v1 = vadd.f32 %v4456_v31, %v1979_v48  ;;  %v3081_v24 = vsel %vm2521_vm5, %v3080_v55, %v3076_v37  ;;  %vm5393_vm5 = vmmov %vm5392_vm0 }
 0x291   :  { %v2770_v6 = vsel %vm5392_vm0, %v2769_v62, %v2765_v16  ;;  %v3086_v0 = vsel %vm5393_vm5, %v3085_v42, %v3081_v24 }
 0x292   :  { %v2779_v56 = vrot.slane %v2240_v14, %v4797_v58  ;;  %v2774_v47 = vrot.slane %v2239_v1, %v4817_v9 }
 0x293   :  { %v2174_v11 = vpop.xlane.xlu1 %2173  ;;  %v2171_v23 = vpop.xlane.xlu0 %2170 }
 0x294   :  { %v2304_v43 = vadd.f32 %v4456_v31, %v2174_v11  ;;  %v2775_v19 = vsel %vm2535_vm4, %v2774_v47, %v2770_v6  ;;  %v2303_v59 = vadd.f32 %v4456_v31, %v2171_v23 }
 0x295   :  { %v2780_v22 = vsel %vm2542_vm12, %v2779_v56, %v2775_v19 }
 0x296   :  { %v3095_v27 = vrot.slane %v2304_v43, %v4797_v58  ;;  %v3102_v53 = vsel %vm3101_vm3, %v2780_v22, %v5182_v35  ;;  %v3090_v45 = vrot.slane %v2303_v59, %v4817_v9 }
 0x297   :  { %v3104_v33 = vsel %vm3103_vm11, %v4874_v46, %v3102_v53 }
 0x298   :  { %v3091_v31 = vsel %vm2535_vm4, %v3090_v45, %v3086_v0  ;;  %v3106_v38 = vsel %vm3105_vm7, %v5078_v17, %v3104_v33 }
 0x299   :  { %v3096_v28 = vsel %vm2542_vm12, %v3095_v27, %v3091_v31  ;;  %v3108_v58 = vsel %vm3107_vm10, %v5177_v51, %v3106_v38 }
 0x29a   :  { %v3110_v35 = vsel %vm3109_vm13, %v3096_v28, %v3108_v58 }
 0x29b   :  { %3112 = vst [vmem:[#allocation8] sm:$0xff] %v3110_v35 }
 0x29c   :  { %3656 = shalt.err (!%p3653_p6)
}
 0x29d   :  { %s3657_s25 = scalar_lea.hbm %s5298_s4, 128 }
 0x29e   :  { %p3658_p7 = scmp.ne.s32.totalorder %s5298_s4, %s3657_s25  ;;  %p3661_p8 = scmp.lt.u32.totalorder %s3657_s25, %s5298_s4 }
 0x2a0   :  { %p3663_p9 = pnand %p3661_p8, %p3658_p7 }
 0x2a2   :  { %3666 = shalt.err (!%p3663_p9)
}
 0x2a3   :  { %3122 = dma.vmem_to_hbm [thread:$0]  %s3120_s21, 128, %s5298_s4, [#allocation5]  }
 0x2a4   :  { %3671 = dma.done.wait [#allocation5], 128  }
 0x2a5   :  { %3672 = vsyncadd [#allocation5], 4294967168 }
 0x2a6   :  { %3126 = vsyncpa [#allocation4], 1 }
 0x2a7   :  { %3127 = vsyncpa [#allocation7], 1 }
 0x2a8   :  { %3128 = vsyncpa [#allocation5], 1 }

</bundles_post_ra>
